<compile_context>
chip_gen: v6e
topology: v6e:2x2x1
jax: 0.10.0
libtpu: 0.0.40
codegen_flags: <defaults>
</compile_context>

<pallas_src>
import jax
import jax.numpy as jnp
from jax import lax
from jax.experimental import pallas as pl
from jax.experimental.pallas import tpu as pltpu

HIDDEN = 25        # LSTM hidden size
INPUT = 1          # LSTM input size
NUM_GATES = 4      # PyTorch gate order along the stacked 4H axis: [i, f, g, o]
GATE_LANES = 128   # each gate padded to its own 128-lane tile
HP = GATE_LANES                 # padded hidden width carried by h / c / whh rows
GP = NUM_GATES * GATE_LANES     # 512 = padded gate-block width


def _lstm_dense_kernel(x_ref, wih_ref, b_ref, whh_ref, ga_ref, gb_ref, wd_ref, bd_ref,
                       y_ref, xp_buf, h_buf):
    # Shapes:
    #   x_ref   (B, T, 1)  input sequence (batch_first, input dim 1)
    #   wih_ref (1, GP)    input->gate weights, gate-tiled, sigmoid gates pre-scaled by 0.5
    #   b_ref   (1, GP)    b_ih + b_hh, same layout / pre-scale
    #   whh_ref (HP, GP)   hidden->gate weights; rows/cols >= HIDDEN inside each tile are 0
    #   ga_ref  (1, GP)    per-lane affine scale applied after the single tanh
    #   gb_ref  (1, GP)    per-lane affine offset applied after the single tanh
    #   wd_ref  (1, HP)    dense weight, lanes >= HIDDEN are 0
    #   bd_ref  (1,)       dense bias (SMEM scalar)
    #   y_ref   (B, T)     output (lane-dense 2-D block)
    #   xp_buf  (T, B, GP) VMEM scratch: per-step input projection + bias
    #   h_buf   (T, B, HP) VMEM scratch: hidden states for the hoisted dense head
    B, T, _ = x_ref.shape
    G = GATE_LANES

    # ---- Prologue (one-time, off the serial recurrence chain) --------------------
    # Input dim is 1, so the input projection is a broadcast multiply; store it
    # time-major so the loop does a single aligned load xp_buf[t] per step.
    x_tb = jnp.transpose(x_ref[...], (1, 0, 2))                # (T, B, 1)
    xp_buf[...] = x_tb * wih_ref[...] + b_ref[...]             # (T, B, GP)

    ga = ga_ref[...]                                           # (1, GP)
    gb = gb_ref[...]                                           # (1, GP)

    # ---- Recurrence ---------------------------------------------------------------
    def step(t, carry):
        h, c = carry                                           # (B, HP), (B, HP)
        z = xp_buf[t] + jnp.dot(h, whh_ref[...],
                                preferred_element_type=jnp.float32)    # (B, GP)
        tz = jnp.tanh(z)                                       # ONE EUP dispatch for all gates
        gates = ga * tz + gb                                   # sigmoid(i,f,o) = 0.5*tanh(./2)+0.5
        i_g = gates[:, 0 * G:1 * G]                            # lane-aligned tiles: no XLU rolls
        f_g = gates[:, 1 * G:2 * G]
        g_g = gates[:, 2 * G:3 * G]
        o_g = gates[:, 3 * G:4 * G]
        c_new = f_g * c + i_g * g_g
        h_new = o_g * jnp.tanh(c_new)                          # cell tanh (second EUP dispatch)
        h_buf[t] = h_new
        return h_new, c_new

    h0 = jnp.zeros((B, HP), jnp.float32)
    c0 = jnp.zeros((B, HP), jnp.float32)
    # Full unroll for short sequences (LLO scheduling visibility); partial unroll keeps
    # that benefit for long T without blowing the 64-vreg budget.
    lax.fori_loop(0, T, step, (h0, c0), unroll=True if T <= 32 else 8)

    # ---- Epilogue: hoisted dense head, lane-dense (B, T) store ---------------------
    hs = h_buf[...]                                            # (T, B, HP)
    y_tb = jnp.sum(hs * wd_ref[...], axis=-1)                  # (T, B) lane reduction
    y_ref[...] = jnp.transpose(y_tb) + bd_ref[0]               # (B, T)


def prepare_params(params):
    """Fold PyTorch LSTM/Linear params into the kernel's padded, pre-scaled layout.

    - Each gate (PyTorch order [i, f, g, o]) gets its own 128-lane tile so every in-loop
      slice is lane-aligned.
    - The i/f/o weights & bias are pre-scaled by 0.5 so sigmoid(x) can be evaluated as
      0.5*tanh(x/2) + 0.5 with a single tanh over the whole gate block.
    - Hidden width is zero-padded 25 -> 128; the padded lanes of h/c stay exactly 0.
    """
    w_ih, w_hh, b_ih, b_hh, w_dense, b_dense = params
    H, G = HIDDEN, GATE_LANES

    pre = jnp.array([0.5, 0.5, 1.0, 0.5], jnp.float32)   # 0.5 for i, f, o ; 1.0 for g

    # Hidden -> gates: whh_g[k, gate*G + j] = pre[gate] * W_hh[gate*H + j, k]
    whh = w_hh.astype(jnp.float32).reshape(NUM_GATES, H, H) * pre[:, None, None]
    whh = jnp.transpose(whh, (2, 0, 1))                          # (h_in, gate, h_out)
    whh = jnp.pad(whh, ((0, HP - H), (0, 0), (0, G - H)))        # (128, 4, 128)
    whh_g = whh.reshape(HP, GP)                                  # (128, 512)

    # Input -> gates (input dim 1) and combined bias, same tile layout + pre-scale.
    wih = w_ih.astype(jnp.float32).reshape(NUM_GATES, H) * pre[:, None]
    wih_g = jnp.pad(wih, ((0, 0), (0, G - H))).reshape(1, GP)    # (1, 512)
    bias = (b_ih + b_hh).astype(jnp.float32).reshape(NUM_GATES, H) * pre[:, None]
    bias_g = jnp.pad(bias, ((0, 0), (0, G - H))).reshape(1, GP)  # (1, 512)

    # Per-lane affine applied after the single tanh.
    ga = jnp.repeat(jnp.array([0.5, 0.5, 1.0, 0.5], jnp.float32), G).reshape(1, GP)
    gb = jnp.repeat(jnp.array([0.5, 0.5, 0.0, 0.5], jnp.float32), G).reshape(1, GP)

    # Dense head, padded to the carried hidden width.
    wd = jnp.pad(w_dense.astype(jnp.float32).reshape(1, H), ((0, 0), (0, HP - H)))  # (1, 128)
    bd = b_dense.astype(jnp.float32).reshape(1)                                     # (1,)

    return wih_g, bias_g, whh_g, ga, gb, wd, bd


def _forward_prepared(x, prep):
    wih_g, bias_g, whh_g, ga, gb, wd, bd = prep
    B, T, _ = x.shape

    y_bt = pl.pallas_call(
        _lstm_dense_kernel,
        out_shape=jax.ShapeDtypeStruct((B, T), jnp.float32),
        in_specs=[
            pl.BlockSpec(memory_space=pltpu.MemorySpace.VMEM),   # x (B, T, 1)
            pl.BlockSpec(memory_space=pltpu.MemorySpace.VMEM),   # wih_g (1, 512)
            pl.BlockSpec(memory_space=pltpu.MemorySpace.VMEM),   # bias_g (1, 512)
            pl.BlockSpec(memory_space=pltpu.MemorySpace.VMEM),   # whh_g (128, 512)
            pl.BlockSpec(memory_space=pltpu.MemorySpace.VMEM),   # ga (1, 512)
            pl.BlockSpec(memory_space=pltpu.MemorySpace.VMEM),   # gb (1, 512)
            pl.BlockSpec(memory_space=pltpu.MemorySpace.VMEM),   # wd (1, 128)
            pl.BlockSpec(memory_space=pltpu.MemorySpace.SMEM),   # bd (1,) scalar
        ],
        out_specs=pl.BlockSpec(memory_space=pltpu.MemorySpace.VMEM),
        scratch_shapes=[
            pltpu.VMEM((T, B, GP), jnp.float32),   # per-step input projection (prologue)
            pltpu.VMEM((T, B, HP), jnp.float32),   # hidden states for the hoisted dense head
        ],
    )(x.astype(jnp.float32), wih_g, bias_g, whh_g, ga, gb, wd, bd)

    return y_bt[..., None]   # (B, T, 1), matching the PyTorch module's output


@jax.jit
def lstm_model_forward(x, params):
    """x: (B, T, 1) float32 -> (B, T, 1) float32 (matches PyTorch forward)."""
    return _forward_prepared(x, prepare_params(params))


def reference_forward(x, params):
    """Pure-JAX reference matching PyTorch nn.LSTM + nn.Linear semantics."""
    w_ih, w_hh, b_ih, b_hh, w_dense, b_dense = params
    B, T, _ = x.shape
    H = HIDDEN

    def step(carry, x_t):
        h, c = carry
        z = x_t @ w_ih.T + b_ih + h @ w_hh.T + b_hh     # (B, 4H), order [i, f, g, o]
        i = jax.nn.sigmoid(z[:, 0 * H:1 * H])
        f = jax.nn.sigmoid(z[:, 1 * H:2 * H])
        g = jnp.tanh(z[:, 2 * H:3 * H])
        o = jax.nn.sigmoid(z[:, 3 * H:4 * H])
        c_new = f * c + i * g
        h_new = o * jnp.tanh(c_new)
        return (h_new, c_new), h_new

    h0 = jnp.zeros((B, H), jnp.float32)
    c0 = jnp.zeros((B, H), jnp.float32)
    _, hs = lax.scan(step, (h0, c0), jnp.transpose(x, (1, 0, 2)))  # (T, B, H)
    hs = jnp.transpose(hs, (1, 0, 2))                              # (B, T, H)
    return hs @ w_dense.T + b_dense


def init_params(key):
    """Deterministic PyTorch-style init: uniform(-1/sqrt(H), 1/sqrt(H))."""
    H = HIDDEN
    k = 1.0 / jnp.sqrt(jnp.float32(H))
    keys = jax.random.split(key, 6)
    w_ih = jax.random.uniform(keys[0], (4 * H, INPUT), jnp.float32, -k, k)
    w_hh = jax.random.uniform(keys[1], (4 * H, H), jnp.float32, -k, k)
    b_ih = jax.random.uniform(keys[2], (4 * H,), jnp.float32, -k, k)
    b_hh = jax.random.uniform(keys[3], (4 * H,), jnp.float32, -k, k)
    w_dense = jax.random.uniform(keys[4], (1, H), jnp.float32, -k, k)
    b_dense = jax.random.uniform(keys[5], (1,), jnp.float32, -k, k)
    return (w_ih, w_hh, b_ih, b_hh, w_dense, b_dense)


if __name__ == "__main__":
    key = jax.random.PRNGKey(0)
    pkey, xkey = jax.random.split(key)
    params = init_params(pkey)

    B, T = 2, 8
    x = jax.random.normal(xkey, (B, T, INPUT), jnp.float32)

    y = jax.block_until_ready(lstm_model_forward(x, params))
    y_ref = jax.block_until_ready(reference_forward(x, params))

    assert y.shape == (B, T, 1), y.shape
    # Tolerance covers the exact-math sigmoid(x) = 0.5*tanh(x/2)+0.5 reconstruction,
    # which differs from jax.nn.sigmoid at the ~1e-6 level in float32.
    assert jnp.allclose(y, y_ref, atol=1e-4, rtol=1e-4), (
        f"max err {jnp.max(jnp.abs(y - y_ref))}")
    print("KERNEL_OK")
</pallas_src>

<mosaic_0001>
module attributes {stable_mosaic.version = 11 : i64} {
  func.func @_lstm_dense_kernel(%arg0: memref<2x8x1xf32, #tpu.memory_space<vmem>>, %arg1: memref<1x512xf32, #tpu.memory_space<vmem>>, %arg2: memref<1x512xf32, #tpu.memory_space<vmem>>, %arg3: memref<128x512xf32, #tpu.memory_space<vmem>>, %arg4: memref<1x512xf32, #tpu.memory_space<vmem>>, %arg5: memref<1x512xf32, #tpu.memory_space<vmem>>, %arg6: memref<1x128xf32, #tpu.memory_space<vmem>>, %arg7: memref<1xf32, #tpu.memory_space<smem>>, %arg8: memref<2x8xf32, #tpu.memory_space<vmem>>, %arg9: memref<8x2x512xf32, #tpu.memory_space<vmem>>, %arg10: memref<8x2x128xf32, #tpu.memory_space<vmem>>) attributes {dimension_semantics = [], scalar_prefetch = 0 : i64, scratch_operands = 2 : i64, tpu.core_type = #tpu.core_type<tc>} {
    %c0 = arith.constant 0 : index
    %c0_0 = arith.constant 0 : index
    %c0_1 = arith.constant 0 : index
    %0 = vector.load %arg0[%c0, %c0_0, %c0_1] : memref<2x8x1xf32, #tpu.memory_space<vmem>>, vector<2x8x1xf32>
    %1 = tpu.transpose %0, [1, 0, 2] : vector<2x8x1xf32> -> vector<8x2x1xf32>
    %c0_2 = arith.constant 0 : index
    %c0_3 = arith.constant 0 : index
    %2 = vector.load %arg1[%c0_2, %c0_3] : memref<1x512xf32, #tpu.memory_space<vmem>>, vector<1x512xf32>
    %3 = vector.shape_cast %2 : vector<1x512xf32> to vector<1x1x512xf32>
    %4 = vector.broadcast %1 : vector<8x2x1xf32> to vector<8x2x512xf32>
    %5 = vector.broadcast %3 : vector<1x1x512xf32> to vector<8x2x512xf32>
    %6 = arith.mulf %4, %5 : vector<8x2x512xf32>
    %c0_4 = arith.constant 0 : index
    %c0_5 = arith.constant 0 : index
    %7 = vector.load %arg2[%c0_4, %c0_5] : memref<1x512xf32, #tpu.memory_space<vmem>>, vector<1x512xf32>
    %8 = vector.shape_cast %7 : vector<1x512xf32> to vector<1x1x512xf32>
    %9 = vector.broadcast %8 : vector<1x1x512xf32> to vector<8x2x512xf32>
    %10 = arith.addf %6, %9 : vector<8x2x512xf32>
    %c0_6 = arith.constant 0 : index
    %c0_7 = arith.constant 0 : index
    %c0_8 = arith.constant 0 : index
    %11 = vector.load %arg9[%c0_6, %c0_7, %c0_8] : memref<8x2x512xf32, #tpu.memory_space<vmem>>, vector<8x2x512xf32>
    tpu.vector_store %arg9[%c0_6, %c0_7, %c0_8], %10 {strides = array<i32>} : memref<8x2x512xf32, #tpu.memory_space<vmem>>, vector<8x2x512xf32>,
    %c0_9 = arith.constant 0 : index
    %c0_10 = arith.constant 0 : index
    %12 = vector.load %arg4[%c0_9, %c0_10] : memref<1x512xf32, #tpu.memory_space<vmem>>, vector<1x512xf32>
    %c0_11 = arith.constant 0 : index
    %c0_12 = arith.constant 0 : index
    %13 = vector.load %arg5[%c0_11, %c0_12] : memref<1x512xf32, #tpu.memory_space<vmem>>, vector<1x512xf32>
    %cst = arith.constant 0.000000e+00 : f32
    %14 = vector.broadcast %cst : f32 to vector<2x128xf32>
    %cst_13 = arith.constant 0.000000e+00 : f32
    %15 = vector.broadcast %cst_13 : f32 to vector<2x128xf32>
    %c0_i32 = arith.constant 0 : i32
    %16 = arith.index_cast %c0_i32 : i32 to index
    %c0_14 = arith.constant 0 : index
    %c0_15 = arith.constant 0 : index
    %17 = vector.load %arg9[%16, %c0_14, %c0_15] : memref<8x2x512xf32, #tpu.memory_space<vmem>>, vector<1x2x512xf32>
    %18 = vector.shape_cast %17 : vector<1x2x512xf32> to vector<2x512xf32>
    %c0_16 = arith.constant 0 : index
    %c0_17 = arith.constant 0 : index
    %19 = vector.load %arg3[%c0_16, %c0_17] : memref<128x512xf32, #tpu.memory_space<vmem>>, vector<128x512xf32>
    %cst_18 = arith.constant dense<0.000000e+00> : vector<2x512xf32>
    %20 = tpu.matmul %14, %19, %cst_18 {dimension_numbers = #tpu.dot_dimension_numbers<[1], [0], [0], [1], [0, 0, 1, 1], [], []>} : vector<2x128xf32>, vector<128x512xf32>, vector<2x512xf32> -> vector<2x512xf32>
    %21 = arith.addf %18, %20 : vector<2x512xf32>
    %22 = math.tanh %21 : vector<2x512xf32>
    %23 = vector.broadcast %12 : vector<1x512xf32> to vector<2x512xf32>
    %24 = arith.mulf %23, %22 : vector<2x512xf32>
    %25 = vector.broadcast %13 : vector<1x512xf32> to vector<2x512xf32>
    %26 = arith.addf %24, %25 : vector<2x512xf32>
    %27 = vector.extract_strided_slice %26 {offsets = [0, 0], sizes = [2, 128], strides = [1, 1]} : vector<2x512xf32> to vector<2x128xf32>
    %28 = vector.extract_strided_slice %26 {offsets = [0, 128], sizes = [2, 128], strides = [1, 1]} : vector<2x512xf32> to vector<2x128xf32>
    %29 = vector.extract_strided_slice %26 {offsets = [0, 256], sizes = [2, 128], strides = [1, 1]} : vector<2x512xf32> to vector<2x128xf32>
    %30 = vector.extract_strided_slice %26 {offsets = [0, 384], sizes = [2, 128], strides = [1, 1]} : vector<2x512xf32> to vector<2x128xf32>
    %31 = arith.mulf %28, %15 : vector<2x128xf32>
    %32 = arith.mulf %27, %29 : vector<2x128xf32>
    %33 = arith.addf %31, %32 : vector<2x128xf32>
    %34 = math.tanh %33 : vector<2x128xf32>
    %35 = arith.mulf %30, %34 : vector<2x128xf32>
    %36 = arith.index_cast %c0_i32 : i32 to index
    %c0_19 = arith.constant 0 : index
    %c0_20 = arith.constant 0 : index
    %37 = vector.load %arg10[%36, %c0_19, %c0_20] : memref<8x2x128xf32, #tpu.memory_space<vmem>>, vector<1x2x128xf32>
    %38 = vector.shape_cast %37 : vector<1x2x128xf32> to vector<2x128xf32>
    %39 = vector.shape_cast %35 : vector<2x128xf32> to vector<1x2x128xf32>
    tpu.vector_store %arg10[%36, %c0_19, %c0_20], %39 {strides = array<i32>} : memref<8x2x128xf32, #tpu.memory_space<vmem>>, vector<1x2x128xf32>,
    %c1_i32 = arith.constant 1 : i32
    %40 = arith.index_cast %c1_i32 : i32 to index
    %c0_21 = arith.constant 0 : index
    %c0_22 = arith.constant 0 : index
    %41 = vector.load %arg9[%40, %c0_21, %c0_22] : memref<8x2x512xf32, #tpu.memory_space<vmem>>, vector<1x2x512xf32>
    %42 = vector.shape_cast %41 : vector<1x2x512xf32> to vector<2x512xf32>
    %c0_23 = arith.constant 0 : index
    %c0_24 = arith.constant 0 : index
    %43 = vector.load %arg3[%c0_23, %c0_24] : memref<128x512xf32, #tpu.memory_space<vmem>>, vector<128x512xf32>
    %cst_25 = arith.constant dense<0.000000e+00> : vector<2x512xf32>
    %44 = tpu.matmul %35, %43, %cst_25 {dimension_numbers = #tpu.dot_dimension_numbers<[1], [0], [0], [1], [0, 0, 1, 1], [], []>} : vector<2x128xf32>, vector<128x512xf32>, vector<2x512xf32> -> vector<2x512xf32>
    %45 = arith.addf %42, %44 : vector<2x512xf32>
    %46 = math.tanh %45 : vector<2x512xf32>
    %47 = vector.broadcast %12 : vector<1x512xf32> to vector<2x512xf32>
    %48 = arith.mulf %47, %46 : vector<2x512xf32>
    %49 = vector.broadcast %13 : vector<1x512xf32> to vector<2x512xf32>
    %50 = arith.addf %48, %49 : vector<2x512xf32>
    %51 = vector.extract_strided_slice %50 {offsets = [0, 0], sizes = [2, 128], strides = [1, 1]} : vector<2x512xf32> to vector<2x128xf32>
    %52 = vector.extract_strided_slice %50 {offsets = [0, 128], sizes = [2, 128], strides = [1, 1]} : vector<2x512xf32> to vector<2x128xf32>
    %53 = vector.extract_strided_slice %50 {offsets = [0, 256], sizes = [2, 128], strides = [1, 1]} : vector<2x512xf32> to vector<2x128xf32>
    %54 = vector.extract_strided_slice %50 {offsets = [0, 384], sizes = [2, 128], strides = [1, 1]} : vector<2x512xf32> to vector<2x128xf32>
    %55 = arith.mulf %52, %33 : vector<2x128xf32>
    %56 = arith.mulf %51, %53 : vector<2x128xf32>
    %57 = arith.addf %55, %56 : vector<2x128xf32>
    %58 = math.tanh %57 : vector<2x128xf32>
    %59 = arith.mulf %54, %58 : vector<2x128xf32>
    %60 = arith.index_cast %c1_i32 : i32 to index
    %c0_26 = arith.constant 0 : index
    %c0_27 = arith.constant 0 : index
    %61 = vector.load %arg10[%60, %c0_26, %c0_27] : memref<8x2x128xf32, #tpu.memory_space<vmem>>, vector<1x2x128xf32>
    %62 = vector.shape_cast %61 : vector<1x2x128xf32> to vector<2x128xf32>
    %63 = vector.shape_cast %59 : vector<2x128xf32> to vector<1x2x128xf32>
    tpu.vector_store %arg10[%60, %c0_26, %c0_27], %63 {strides = array<i32>} : memref<8x2x128xf32, #tpu.memory_space<vmem>>, vector<1x2x128xf32>,
    %c2_i32 = arith.constant 2 : i32
    %64 = arith.index_cast %c2_i32 : i32 to index
    %c0_28 = arith.constant 0 : index
    %c0_29 = arith.constant 0 : index
    %65 = vector.load %arg9[%64, %c0_28, %c0_29] : memref<8x2x512xf32, #tpu.memory_space<vmem>>, vector<1x2x512xf32>
    %66 = vector.shape_cast %65 : vector<1x2x512xf32> to vector<2x512xf32>
    %c0_30 = arith.constant 0 : index
    %c0_31 = arith.constant 0 : index
    %67 = vector.load %arg3[%c0_30, %c0_31] : memref<128x512xf32, #tpu.memory_space<vmem>>, vector<128x512xf32>
    %cst_32 = arith.constant dense<0.000000e+00> : vector<2x512xf32>
    %68 = tpu.matmul %59, %67, %cst_32 {dimension_numbers = #tpu.dot_dimension_numbers<[1], [0], [0], [1], [0, 0, 1, 1], [], []>} : vector<2x128xf32>, vector<128x512xf32>, vector<2x512xf32> -> vector<2x512xf32>
    %69 = arith.addf %66, %68 : vector<2x512xf32>
    %70 = math.tanh %69 : vector<2x512xf32>
    %71 = vector.broadcast %12 : vector<1x512xf32> to vector<2x512xf32>
    %72 = arith.mulf %71, %70 : vector<2x512xf32>
    %73 = vector.broadcast %13 : vector<1x512xf32> to vector<2x512xf32>
    %74 = arith.addf %72, %73 : vector<2x512xf32>
    %75 = vector.extract_strided_slice %74 {offsets = [0, 0], sizes = [2, 128], strides = [1, 1]} : vector<2x512xf32> to vector<2x128xf32>
    %76 = vector.extract_strided_slice %74 {offsets = [0, 128], sizes = [2, 128], strides = [1, 1]} : vector<2x512xf32> to vector<2x128xf32>
    %77 = vector.extract_strided_slice %74 {offsets = [0, 256], sizes = [2, 128], strides = [1, 1]} : vector<2x512xf32> to vector<2x128xf32>
    %78 = vector.extract_strided_slice %74 {offsets = [0, 384], sizes = [2, 128], strides = [1, 1]} : vector<2x512xf32> to vector<2x128xf32>
    %79 = arith.mulf %76, %57 : vector<2x128xf32>
    %80 = arith.mulf %75, %77 : vector<2x128xf32>
    %81 = arith.addf %79, %80 : vector<2x128xf32>
    %82 = math.tanh %81 : vector<2x128xf32>
    %83 = arith.mulf %78, %82 : vector<2x128xf32>
    %84 = arith.index_cast %c2_i32 : i32 to index
    %c0_33 = arith.constant 0 : index
    %c0_34 = arith.constant 0 : index
    %85 = vector.load %arg10[%84, %c0_33, %c0_34] : memref<8x2x128xf32, #tpu.memory_space<vmem>>, vector<1x2x128xf32>
    %86 = vector.shape_cast %85 : vector<1x2x128xf32> to vector<2x128xf32>
    %87 = vector.shape_cast %83 : vector<2x128xf32> to vector<1x2x128xf32>
    tpu.vector_store %arg10[%84, %c0_33, %c0_34], %87 {strides = array<i32>} : memref<8x2x128xf32, #tpu.memory_space<vmem>>, vector<1x2x128xf32>,
    %c3_i32 = arith.constant 3 : i32
    %88 = arith.index_cast %c3_i32 : i32 to index
    %c0_35 = arith.constant 0 : index
    %c0_36 = arith.constant 0 : index
    %89 = vector.load %arg9[%88, %c0_35, %c0_36] : memref<8x2x512xf32, #tpu.memory_space<vmem>>, vector<1x2x512xf32>
    %90 = vector.shape_cast %89 : vector<1x2x512xf32> to vector<2x512xf32>
    %c0_37 = arith.constant 0 : index
    %c0_38 = arith.constant 0 : index
    %91 = vector.load %arg3[%c0_37, %c0_38] : memref<128x512xf32, #tpu.memory_space<vmem>>, vector<128x512xf32>
    %cst_39 = arith.constant dense<0.000000e+00> : vector<2x512xf32>
    %92 = tpu.matmul %83, %91, %cst_39 {dimension_numbers = #tpu.dot_dimension_numbers<[1], [0], [0], [1], [0, 0, 1, 1], [], []>} : vector<2x128xf32>, vector<128x512xf32>, vector<2x512xf32> -> vector<2x512xf32>
    %93 = arith.addf %90, %92 : vector<2x512xf32>
    %94 = math.tanh %93 : vector<2x512xf32>
    %95 = vector.broadcast %12 : vector<1x512xf32> to vector<2x512xf32>
    %96 = arith.mulf %95, %94 : vector<2x512xf32>
    %97 = vector.broadcast %13 : vector<1x512xf32> to vector<2x512xf32>
    %98 = arith.addf %96, %97 : vector<2x512xf32>
    %99 = vector.extract_strided_slice %98 {offsets = [0, 0], sizes = [2, 128], strides = [1, 1]} : vector<2x512xf32> to vector<2x128xf32>
    %100 = vector.extract_strided_slice %98 {offsets = [0, 128], sizes = [2, 128], strides = [1, 1]} : vector<2x512xf32> to vector<2x128xf32>
    %101 = vector.extract_strided_slice %98 {offsets = [0, 256], sizes = [2, 128], strides = [1, 1]} : vector<2x512xf32> to vector<2x128xf32>
    %102 = vector.extract_strided_slice %98 {offsets = [0, 384], sizes = [2, 128], strides = [1, 1]} : vector<2x512xf32> to vector<2x128xf32>
    %103 = arith.mulf %100, %81 : vector<2x128xf32>
    %104 = arith.mulf %99, %101 : vector<2x128xf32>
    %105 = arith.addf %103, %104 : vector<2x128xf32>
    %106 = math.tanh %105 : vector<2x128xf32>
    %107 = arith.mulf %102, %106 : vector<2x128xf32>
    %108 = arith.index_cast %c3_i32 : i32 to index
    %c0_40 = arith.constant 0 : index
    %c0_41 = arith.constant 0 : index
    %109 = vector.load %arg10[%108, %c0_40, %c0_41] : memref<8x2x128xf32, #tpu.memory_space<vmem>>, vector<1x2x128xf32>
    %110 = vector.shape_cast %109 : vector<1x2x128xf32> to vector<2x128xf32>
    %111 = vector.shape_cast %107 : vector<2x128xf32> to vector<1x2x128xf32>
    tpu.vector_store %arg10[%108, %c0_40, %c0_41], %111 {strides = array<i32>} : memref<8x2x128xf32, #tpu.memory_space<vmem>>, vector<1x2x128xf32>,
    %c4_i32 = arith.constant 4 : i32
    %112 = arith.index_cast %c4_i32 : i32 to index
    %c0_42 = arith.constant 0 : index
    %c0_43 = arith.constant 0 : index
    %113 = vector.load %arg9[%112, %c0_42, %c0_43] : memref<8x2x512xf32, #tpu.memory_space<vmem>>, vector<1x2x512xf32>
    %114 = vector.shape_cast %113 : vector<1x2x512xf32> to vector<2x512xf32>
    %c0_44 = arith.constant 0 : index
    %c0_45 = arith.constant 0 : index
    %115 = vector.load %arg3[%c0_44, %c0_45] : memref<128x512xf32, #tpu.memory_space<vmem>>, vector<128x512xf32>
    %cst_46 = arith.constant dense<0.000000e+00> : vector<2x512xf32>
    %116 = tpu.matmul %107, %115, %cst_46 {dimension_numbers = #tpu.dot_dimension_numbers<[1], [0], [0], [1], [0, 0, 1, 1], [], []>} : vector<2x128xf32>, vector<128x512xf32>, vector<2x512xf32> -> vector<2x512xf32>
    %117 = arith.addf %114, %116 : vector<2x512xf32>
    %118 = math.tanh %117 : vector<2x512xf32>
    %119 = vector.broadcast %12 : vector<1x512xf32> to vector<2x512xf32>
    %120 = arith.mulf %119, %118 : vector<2x512xf32>
    %121 = vector.broadcast %13 : vector<1x512xf32> to vector<2x512xf32>
    %122 = arith.addf %120, %121 : vector<2x512xf32>
    %123 = vector.extract_strided_slice %122 {offsets = [0, 0], sizes = [2, 128], strides = [1, 1]} : vector<2x512xf32> to vector<2x128xf32>
    %124 = vector.extract_strided_slice %122 {offsets = [0, 128], sizes = [2, 128], strides = [1, 1]} : vector<2x512xf32> to vector<2x128xf32>
    %125 = vector.extract_strided_slice %122 {offsets = [0, 256], sizes = [2, 128], strides = [1, 1]} : vector<2x512xf32> to vector<2x128xf32>
    %126 = vector.extract_strided_slice %122 {offsets = [0, 384], sizes = [2, 128], strides = [1, 1]} : vector<2x512xf32> to vector<2x128xf32>
    %127 = arith.mulf %124, %105 : vector<2x128xf32>
    %128 = arith.mulf %123, %125 : vector<2x128xf32>
    %129 = arith.addf %127, %128 : vector<2x128xf32>
    %130 = math.tanh %129 : vector<2x128xf32>
    %131 = arith.mulf %126, %130 : vector<2x128xf32>
    %132 = arith.index_cast %c4_i32 : i32 to index
    %c0_47 = arith.constant 0 : index
    %c0_48 = arith.constant 0 : index
    %133 = vector.load %arg10[%132, %c0_47, %c0_48] : memref<8x2x128xf32, #tpu.memory_space<vmem>>, vector<1x2x128xf32>
    %134 = vector.shape_cast %133 : vector<1x2x128xf32> to vector<2x128xf32>
    %135 = vector.shape_cast %131 : vector<2x128xf32> to vector<1x2x128xf32>
    tpu.vector_store %arg10[%132, %c0_47, %c0_48], %135 {strides = array<i32>} : memref<8x2x128xf32, #tpu.memory_space<vmem>>, vector<1x2x128xf32>,
    %c5_i32 = arith.constant 5 : i32
    %136 = arith.index_cast %c5_i32 : i32 to index
    %c0_49 = arith.constant 0 : index
    %c0_50 = arith.constant 0 : index
    %137 = vector.load %arg9[%136, %c0_49, %c0_50] : memref<8x2x512xf32, #tpu.memory_space<vmem>>, vector<1x2x512xf32>
    %138 = vector.shape_cast %137 : vector<1x2x512xf32> to vector<2x512xf32>
    %c0_51 = arith.constant 0 : index
    %c0_52 = arith.constant 0 : index
    %139 = vector.load %arg3[%c0_51, %c0_52] : memref<128x512xf32, #tpu.memory_space<vmem>>, vector<128x512xf32>
    %cst_53 = arith.constant dense<0.000000e+00> : vector<2x512xf32>
    %140 = tpu.matmul %131, %139, %cst_53 {dimension_numbers = #tpu.dot_dimension_numbers<[1], [0], [0], [1], [0, 0, 1, 1], [], []>} : vector<2x128xf32>, vector<128x512xf32>, vector<2x512xf32> -> vector<2x512xf32>
    %141 = arith.addf %138, %140 : vector<2x512xf32>
    %142 = math.tanh %141 : vector<2x512xf32>
    %143 = vector.broadcast %12 : vector<1x512xf32> to vector<2x512xf32>
    %144 = arith.mulf %143, %142 : vector<2x512xf32>
    %145 = vector.broadcast %13 : vector<1x512xf32> to vector<2x512xf32>
    %146 = arith.addf %144, %145 : vector<2x512xf32>
    %147 = vector.extract_strided_slice %146 {offsets = [0, 0], sizes = [2, 128], strides = [1, 1]} : vector<2x512xf32> to vector<2x128xf32>
    %148 = vector.extract_strided_slice %146 {offsets = [0, 128], sizes = [2, 128], strides = [1, 1]} : vector<2x512xf32> to vector<2x128xf32>
    %149 = vector.extract_strided_slice %146 {offsets = [0, 256], sizes = [2, 128], strides = [1, 1]} : vector<2x512xf32> to vector<2x128xf32>
    %150 = vector.extract_strided_slice %146 {offsets = [0, 384], sizes = [2, 128], strides = [1, 1]} : vector<2x512xf32> to vector<2x128xf32>
    %151 = arith.mulf %148, %129 : vector<2x128xf32>
    %152 = arith.mulf %147, %149 : vector<2x128xf32>
    %153 = arith.addf %151, %152 : vector<2x128xf32>
    %154 = math.tanh %153 : vector<2x128xf32>
    %155 = arith.mulf %150, %154 : vector<2x128xf32>
    %156 = arith.index_cast %c5_i32 : i32 to index
    %c0_54 = arith.constant 0 : index
    %c0_55 = arith.constant 0 : index
    %157 = vector.load %arg10[%156, %c0_54, %c0_55] : memref<8x2x128xf32, #tpu.memory_space<vmem>>, vector<1x2x128xf32>
    %158 = vector.shape_cast %157 : vector<1x2x128xf32> to vector<2x128xf32>
    %159 = vector.shape_cast %155 : vector<2x128xf32> to vector<1x2x128xf32>
    tpu.vector_store %arg10[%156, %c0_54, %c0_55], %159 {strides = array<i32>} : memref<8x2x128xf32, #tpu.memory_space<vmem>>, vector<1x2x128xf32>,
    %c6_i32 = arith.constant 6 : i32
    %160 = arith.index_cast %c6_i32 : i32 to index
    %c0_56 = arith.constant 0 : index
    %c0_57 = arith.constant 0 : index
    %161 = vector.load %arg9[%160, %c0_56, %c0_57] : memref<8x2x512xf32, #tpu.memory_space<vmem>>, vector<1x2x512xf32>
    %162 = vector.shape_cast %161 : vector<1x2x512xf32> to vector<2x512xf32>
    %c0_58 = arith.constant 0 : index
    %c0_59 = arith.constant 0 : index
    %163 = vector.load %arg3[%c0_58, %c0_59] : memref<128x512xf32, #tpu.memory_space<vmem>>, vector<128x512xf32>
    %cst_60 = arith.constant dense<0.000000e+00> : vector<2x512xf32>
    %164 = tpu.matmul %155, %163, %cst_60 {dimension_numbers = #tpu.dot_dimension_numbers<[1], [0], [0], [1], [0, 0, 1, 1], [], []>} : vector<2x128xf32>, vector<128x512xf32>, vector<2x512xf32> -> vector<2x512xf32>
    %165 = arith.addf %162, %164 : vector<2x512xf32>
    %166 = math.tanh %165 : vector<2x512xf32>
    %167 = vector.broadcast %12 : vector<1x512xf32> to vector<2x512xf32>
    %168 = arith.mulf %167, %166 : vector<2x512xf32>
    %169 = vector.broadcast %13 : vector<1x512xf32> to vector<2x512xf32>
    %170 = arith.addf %168, %169 : vector<2x512xf32>
    %171 = vector.extract_strided_slice %170 {offsets = [0, 0], sizes = [2, 128], strides = [1, 1]} : vector<2x512xf32> to vector<2x128xf32>
    %172 = vector.extract_strided_slice %170 {offsets = [0, 128], sizes = [2, 128], strides = [1, 1]} : vector<2x512xf32> to vector<2x128xf32>
    %173 = vector.extract_strided_slice %170 {offsets = [0, 256], sizes = [2, 128], strides = [1, 1]} : vector<2x512xf32> to vector<2x128xf32>
    %174 = vector.extract_strided_slice %170 {offsets = [0, 384], sizes = [2, 128], strides = [1, 1]} : vector<2x512xf32> to vector<2x128xf32>
    %175 = arith.mulf %172, %153 : vector<2x128xf32>
    %176 = arith.mulf %171, %173 : vector<2x128xf32>
    %177 = arith.addf %175, %176 : vector<2x128xf32>
    %178 = math.tanh %177 : vector<2x128xf32>
    %179 = arith.mulf %174, %178 : vector<2x128xf32>
    %180 = arith.index_cast %c6_i32 : i32 to index
    %c0_61 = arith.constant 0 : index
    %c0_62 = arith.constant 0 : index
    %181 = vector.load %arg10[%180, %c0_61, %c0_62] : memref<8x2x128xf32, #tpu.memory_space<vmem>>, vector<1x2x128xf32>
    %182 = vector.shape_cast %181 : vector<1x2x128xf32> to vector<2x128xf32>
    %183 = vector.shape_cast %179 : vector<2x128xf32> to vector<1x2x128xf32>
    tpu.vector_store %arg10[%180, %c0_61, %c0_62], %183 {strides = array<i32>} : memref<8x2x128xf32, #tpu.memory_space<vmem>>, vector<1x2x128xf32>,
    %c7_i32 = arith.constant 7 : i32
    %184 = arith.index_cast %c7_i32 : i32 to index
    %c0_63 = arith.constant 0 : index
    %c0_64 = arith.constant 0 : index
    %185 = vector.load %arg9[%184, %c0_63, %c0_64] : memref<8x2x512xf32, #tpu.memory_space<vmem>>, vector<1x2x512xf32>
    %186 = vector.shape_cast %185 : vector<1x2x512xf32> to vector<2x512xf32>
    %c0_65 = arith.constant 0 : index
    %c0_66 = arith.constant 0 : index
    %187 = vector.load %arg3[%c0_65, %c0_66] : memref<128x512xf32, #tpu.memory_space<vmem>>, vector<128x512xf32>
    %cst_67 = arith.constant dense<0.000000e+00> : vector<2x512xf32>
    %188 = tpu.matmul %179, %187, %cst_67 {dimension_numbers = #tpu.dot_dimension_numbers<[1], [0], [0], [1], [0, 0, 1, 1], [], []>} : vector<2x128xf32>, vector<128x512xf32>, vector<2x512xf32> -> vector<2x512xf32>
    %189 = arith.addf %186, %188 : vector<2x512xf32>
    %190 = math.tanh %189 : vector<2x512xf32>
    %191 = vector.broadcast %12 : vector<1x512xf32> to vector<2x512xf32>
    %192 = arith.mulf %191, %190 : vector<2x512xf32>
    %193 = vector.broadcast %13 : vector<1x512xf32> to vector<2x512xf32>
    %194 = arith.addf %192, %193 : vector<2x512xf32>
    %195 = vector.extract_strided_slice %194 {offsets = [0, 0], sizes = [2, 128], strides = [1, 1]} : vector<2x512xf32> to vector<2x128xf32>
    %196 = vector.extract_strided_slice %194 {offsets = [0, 128], sizes = [2, 128], strides = [1, 1]} : vector<2x512xf32> to vector<2x128xf32>
    %197 = vector.extract_strided_slice %194 {offsets = [0, 256], sizes = [2, 128], strides = [1, 1]} : vector<2x512xf32> to vector<2x128xf32>
    %198 = vector.extract_strided_slice %194 {offsets = [0, 384], sizes = [2, 128], strides = [1, 1]} : vector<2x512xf32> to vector<2x128xf32>
    %199 = arith.mulf %196, %177 : vector<2x128xf32>
    %200 = arith.mulf %195, %197 : vector<2x128xf32>
    %201 = arith.addf %199, %200 : vector<2x128xf32>
    %202 = math.tanh %201 : vector<2x128xf32>
    %203 = arith.mulf %198, %202 : vector<2x128xf32>
    %204 = arith.index_cast %c7_i32 : i32 to index
    %c0_68 = arith.constant 0 : index
    %c0_69 = arith.constant 0 : index
    %205 = vector.load %arg10[%204, %c0_68, %c0_69] : memref<8x2x128xf32, #tpu.memory_space<vmem>>, vector<1x2x128xf32>
    %206 = vector.shape_cast %205 : vector<1x2x128xf32> to vector<2x128xf32>
    %207 = vector.shape_cast %203 : vector<2x128xf32> to vector<1x2x128xf32>
    tpu.vector_store %arg10[%204, %c0_68, %c0_69], %207 {strides = array<i32>} : memref<8x2x128xf32, #tpu.memory_space<vmem>>, vector<1x2x128xf32>,
    %c8_i32 = arith.constant 8 : i32
    %c0_70 = arith.constant 0 : index
    %c0_71 = arith.constant 0 : index
    %c0_72 = arith.constant 0 : index
    %208 = vector.load %arg10[%c0_70, %c0_71, %c0_72] : memref<8x2x128xf32, #tpu.memory_space<vmem>>, vector<8x2x128xf32>
    %c0_73 = arith.constant 0 : index
    %c0_74 = arith.constant 0 : index
    %209 = vector.load %arg6[%c0_73, %c0_74] : memref<1x128xf32, #tpu.memory_space<vmem>>, vector<1x128xf32>
    %210 = vector.shape_cast %209 : vector<1x128xf32> to vector<1x1x128xf32>
    %211 = vector.broadcast %210 : vector<1x1x128xf32> to vector<8x2x128xf32>
    %212 = arith.mulf %208, %211 : vector<8x2x128xf32>
    %cst_75 = arith.constant dense<0.000000e+00> : vector<8x2xf32>
    %213 = vector.multi_reduction <add>, %212, %cst_75 [2] : vector<8x2x128xf32> to vector<8x2xf32>
    %214 = tpu.transpose %213, [1, 0] : vector<8x2xf32> -> vector<2x8xf32>
    %c0_76 = arith.constant 0 : index
    %215 = memref.load %arg7[%c0_76] : memref<1xf32, #tpu.memory_space<smem>>
    %216 = vector.broadcast %215 : f32 to vector<2x8xf32>
    %217 = arith.addf %214, %216 : vector<2x8xf32>
    %c0_77 = arith.constant 0 : index
    %c0_78 = arith.constant 0 : index
    %218 = vector.load %arg8[%c0_77, %c0_78] : memref<2x8xf32, #tpu.memory_space<vmem>>, vector<2x8xf32>
    tpu.vector_store %arg8[%c0_77, %c0_78], %217 {strides = array<i32>} : memref<2x8xf32, #tpu.memory_space<vmem>>, vector<2x8xf32>,
    return
  }
}

</mosaic_0001>

<bundles_post_ra>
// kernel: lstm_model_forward.1
= control target key start
LH: loop header
LB: loop body
LE: loop exit
PB: predicated region body
PF: predicated region fallthrough
CT: control target
= control target key end

     0   :  { %v2844_v30 = vmov 1983009808   ;;  %v4722_v32 = vlaneseq  ;;  %v2845_v49 = vmov 1934713408   ;;  %s4713_s0 = inlined_call_operand.vmem [shape: f32[2,8,1], index: 0, kind: input, shape index: {}]   ;;  %s4714_s1 = inlined_call_operand.vmem [shape: f32[1,512], index: 1, kind: input, shape index: {}]   ;;  %s4715_s2 = inlined_call_operand.vmem [shape: f32[1,512], index: 2, kind: input, shape index: {}]   ;;  %s4716_s3 = inlined_call_operand.vmem [shape: f32[128,512], index: 3, kind: input, shape index: {}]   ;;  %s4717_s4 = inlined_call_operand.vmem [shape: f32[1,512], index: 4, kind: input, shape index: {}]   ;;  %s4718_s5 = inlined_call_operand.vmem [shape: f32[1,512], index: 5, kind: input, shape index: {}]   ;;  %s4719_s6 = inlined_call_operand.vmem [shape: f32[1,128], index: 6, kind: input, shape index: {}]   ;;  %s4720_s7 = inlined_call_operand.<no memory space> [shape: f32[1], index: 7, kind: input, shape index: {}]   ;;  %s4721_s8 = inlined_call_operand.hbm [shape: f32[2,8], index: 8, kind: output, shape index: {}]  }
   0x1   :  { %v2897_v0 = vld [vmem:[%s4716_s3 + $0x1e8] sm:$0xff]  ;;  %v2902_v1 = vld [vmem:[%s4716_s3 + $0x1f8] sm:$0xff]  ;;  %v2907_v2 = vld [vmem:[%s4716_s3 + $0x1e0] sm:$0xff]  ;;  %v35_v31 = vunpack.c.l.s4 %v2844_v30  ;;  %v66_v50 = vunpack.c.l.s4 %v2845_v49 }
   0x2   :  { %498 = vmatprep.subr.mxu0 %v2897_v0  ;;  %569 = vmatprep.subr.mxu1 %v2902_v1  ;;  %v2914_v3 = vld [vmem:[%s4716_s3 + $0x1f0] sm:$0xff]  ;;  %v2919_v4 = vld [vmem:[%s4716_s3 + $0x1c8] sm:$0xff]  ;;  %v2924_v5 = vld [vmem:[%s4716_s3 + $0x1d8] sm:$0xff]  ;;  %v3117_v42 = vshrl.u32 %v4722_v32, 7 }
   0x3   :  { %499 = vmatpush1.msra.mxu0 %v2907_v2  ;;  %570 = vmatpush1.msra.mxu1 %v2914_v3  ;;  %v2931_v6 = vld [vmem:[%s4716_s3 + $0x1c0] sm:$0xff]  ;;  %v2936_v7 = vld [vmem:[%s4716_s3 + $0x1d0] sm:$0xff]  ;;  %v2941_v8 = vld [vmem:[%s4716_s3 + $0x1a8] sm:$0xff]  ;;  %v36_v41 = vunpack.c.0.s8 %v35_v31 }
   0x4   :  { %500 = vmatprep.subr.mxu0 %v2919_v4  ;;  %571 = vmatprep.subr.mxu1 %v2924_v5  ;;  %v2948_v9 = vld [vmem:[%s4716_s3 + $0x1b8] sm:$0xff]  ;;  %v2953_v10 = vld [vmem:[%s4716_s3 + $0x1a0] sm:$0xff]  ;;  %v2958_v11 = vld [vmem:[%s4716_s3 + $0x1b0] sm:$0xff]  ;;  %4897 = vst [vmem:[#allocation8_spill] sm:$0xff] %v3117_v42 }
   0x5   :  { %501 = vmatpush1.msra.mxu0 %v2931_v6  ;;  %572 = vmatpush1.msra.mxu1 %v2936_v7  ;;  %v2965_v12 = vld [vmem:[%s4716_s3 + $0x188] sm:$0xff]  ;;  %v2970_v13 = vld [vmem:[%s4716_s3 + $0x198] sm:$0xff]  ;;  %v2977_v14 = vld [vmem:[%s4716_s3 + $0x180] sm:$0xff]  ;;  %v3173_v54 = vsub.s32 %v36_v41, %v3117_v42 }
   0x6   :  { %502 = vmatprep.subr.mxu0 %v2941_v8  ;;  %573 = vmatprep.subr.mxu1 %v2948_v9  ;;  %v2982_v15 = vld [vmem:[%s4716_s3 + $0x190] sm:$0xff]  ;;  %v2989_v16 = vld [vmem:[%s4716_s3 + $0x168] sm:$0xff]  ;;  %v2994_v17 = vld [vmem:[%s4716_s3 + $0x178] sm:$0xff] }
   0x7   :  { %503 = vmatpush1.msra.mxu0 %v2953_v10  ;;  %574 = vmatpush1.msra.mxu1 %v2958_v11  ;;  %v3001_v18 = vld [vmem:[%s4716_s3 + $0x160] sm:$0xff]  ;;  %v3006_v19 = vld [vmem:[%s4716_s3 + $0x170] sm:$0xff]  ;;  %v3013_v20 = vld [vmem:[%s4716_s3 + $0x148] sm:$0xff] }
   0x8   :  { %504 = vmatprep.subr.mxu0 %v2965_v12  ;;  %575 = vmatprep.subr.mxu1 %v2970_v13  ;;  %v3018_v21 = vld [vmem:[%s4716_s3 + $0x158] sm:$0xff]  ;;  %v3025_v22 = vld [vmem:[%s4716_s3 + $0x140] sm:$0xff]  ;;  %v3030_v23 = vld [vmem:[%s4716_s3 + $0x150] sm:$0xff] }
   0x9   :  { %505 = vmatpush1.msra.mxu0 %v2977_v14  ;;  %576 = vmatpush1.msra.mxu1 %v2982_v15  ;;  %v3037_v24 = vld [vmem:[%s4716_s3 + $0x128] sm:$0xff]  ;;  %v3042_v25 = vld [vmem:[%s4716_s3 + $0x138] sm:$0xff]  ;;  %v3049_v26 = vld [vmem:[%s4716_s3 + $0x120] sm:$0xff] }
   0xa   :  { %506 = vmatprep.subr.mxu0 %v2989_v16  ;;  %577 = vmatprep.subr.mxu1 %v2994_v17  ;;  %v3054_v27 = vld [vmem:[%s4716_s3 + $0x130] sm:$0xff]  ;;  %v3061_v28 = vld [vmem:[%s4716_s3 + $0x108] sm:$0xff]  ;;  %v3066_v29 = vld [vmem:[%s4716_s3 + $0x118] sm:$0xff] }
   0xb   :  { %507 = vmatpush1.msra.mxu0 %v3001_v18  ;;  %578 = vmatpush1.msra.mxu1 %v3006_v19  ;;  %v3073_v33 = vld [vmem:[%s4716_s3 + $0x100] sm:$0xff]  ;;  %v3078_v34 = vld [vmem:[%s4716_s3 + $0x110] sm:$0xff]  ;;  %v3085_v35 = vld [vmem:[%s4716_s3 + $0xe8] sm:$0xff] }
   0xc   :  { %508 = vmatprep.subr.mxu0 %v3013_v20  ;;  %579 = vmatprep.subr.mxu1 %v3018_v21  ;;  %v3090_v36 = vld [vmem:[%s4716_s3 + $0xf8] sm:$0xff]  ;;  %v3097_v37 = vld [vmem:[%s4716_s3 + $0xe0] sm:$0xff]  ;;  %v3102_v38 = vld [vmem:[%s4716_s3 + $0xf0] sm:$0xff] }
   0xd   :  { %509 = vmatpush1.msra.mxu0 %v3025_v22  ;;  %580 = vmatpush1.msra.mxu1 %v3030_v23  ;;  %v3109_v39 = vld [vmem:[%s4716_s3 + $0xc8] sm:$0xff]  ;;  %v3114_v40 = vld [vmem:[%s4716_s3 + $0xd8] sm:$0xff]  ;;  %v3124_v43 = vld [vmem:[%s4716_s3 + $0xc0] sm:$0xff] }
   0xe   :  { %510 = vmatprep.subr.mxu0 %v3037_v24  ;;  %581 = vmatprep.subr.mxu1 %v3042_v25  ;;  %4898 = vst [vmem:[#allocation9_spill] sm:$0xff] %v3124_v43  ;;  %v3129_v44 = vld [vmem:[%s4716_s3 + $0xd0] sm:$0xff]  ;;  %v3136_v45 = vld [vmem:[%s4716_s3 + $0xa8] sm:$0xff]  ;;  %v3141_v46 = vld [vmem:[%s4716_s3 + $0xb8] sm:$0xff] }
   0xf   :  { %511 = vmatpush1.msra.mxu0 %v3049_v26  ;;  %582 = vmatpush1.msra.mxu1 %v3054_v27  ;;  %4899 = vst [vmem:[#allocation10_spill] sm:$0xff] %v3129_v44  ;;  %4900 = vst [vmem:[#allocation11_spill] sm:$0xff] %v3136_v45  ;;  %v3148_v47 = vld [vmem:[%s4716_s3 + $0xa0] sm:$0xff]  ;;  %v3153_v48 = vld [vmem:[%s4716_s3 + $0xb0] sm:$0xff] }
  0x10   :  { %512 = vmatprep.subr.mxu0 %v3061_v28  ;;  %583 = vmatprep.subr.mxu1 %v3066_v29  ;;  %4901 = vst [vmem:[#allocation12_spill] sm:$0xff] %v3141_v46  ;;  %4902 = vst [vmem:[#allocation13_spill] sm:$0xff] %v3148_v47  ;;  %v3160_v51 = vld [vmem:[%s4716_s3 + $0x88] sm:$0xff]  ;;  %v3165_v52 = vld [vmem:[%s4716_s3 + $0x98] sm:$0xff] }
  0x11   :  { %513 = vmatpush1.msra.mxu0 %v3073_v33  ;;  %584 = vmatpush1.msra.mxu1 %v3078_v34  ;;  %4903 = vst [vmem:[#allocation14_spill] sm:$0xff] %v3153_v48  ;;  %4904 = vst [vmem:[#allocation15_spill] sm:$0xff] %v3160_v51  ;;  %v3170_v53 = vld [vmem:[%s4716_s3 + $0x80] sm:$0xff]  ;;  %v3180_v55 = vld [vmem:[%s4716_s3 + $0x90] sm:$0xff] }
  0x12   :  { %514 = vmatprep.subr.mxu0 %v3085_v35  ;;  %585 = vmatprep.subr.mxu1 %v3090_v36  ;;  %4905 = vst [vmem:[#allocation16_spill] sm:$0xff] %v3165_v52  ;;  %4906 = vst [vmem:[#allocation17_spill] sm:$0xff] %v3170_v53  ;;  %v31_v56 = vld [vmem:[%s4713_s0] sm:$0xff]  ;;  %v32_v57 = vld [vmem:[%s4713_s0 + $0x8] sm:$0xff] }
  0x13   :  { %515 = vmatpush1.msra.mxu0 %v3097_v37  ;;  %586 = vmatpush1.msra.mxu1 %v3102_v38  ;;  %4907 = vst [vmem:[#allocation18_spill] sm:$0xff] %v3180_v55  ;;  %v3193_v58 = vld [vmem:[%s4716_s3 + $0x68] sm:$0xff]  ;;  %v3198_v59 = vld [vmem:[%s4716_s3 + $0x78] sm:$0xff] }
  0x14   :  { %516 = vmatprep.subr.mxu0 %v3109_v39  ;;  %587 = vmatprep.subr.mxu1 %v3114_v40  ;;  %4908 = vst [vmem:[#allocation19_spill] sm:$0xff] %v3193_v58  ;;  %4909 = vst [vmem:[#allocation20_spill] sm:$0xff] %v3198_v59 }
  0x15   :  { %517 = vmatpush1.msra.mxu0 %v3124_v43  ;;  %588 = vmatpush1.msra.mxu1 %v3129_v44 }
  0x16   :  { %518 = vmatprep.subr.mxu0 %v3136_v45  ;;  %589 = vmatprep.subr.mxu1 %v3141_v46 }
  0x17   :  { %519 = vmatpush1.msra.mxu0 %v3148_v47  ;;  %590 = vmatpush1.msra.mxu1 %v3153_v48 }
  0x18   :  { %14 = vsyncpa [#allocation6], 0  ;;  %520 = vmatprep.subr.mxu0 %v3160_v51  ;;  %591 = vmatprep.subr.mxu1 %v3165_v52  ;;  %v3205_v60 = vld [vmem:[%s4716_s3 + $0x60] sm:$0xff]  ;;  %v3210_v61 = vld [vmem:[%s4716_s3 + $0x70] sm:$0xff]  ;;  %v67_v62 = vunpack.c.0.s8 %v66_v50  ;;  %v3225_v31 = vrot.slane %v31_v56, %v3173_v54  ;;  %v3228_v41 = vrot.slane %v32_v57, %v3173_v54  ;;  %vm2648_vm0 = vcmask 1041408   ;;  %s2848_s20 = smov [#allocation5]  }
  0x19   :  { %4910 = vst [vmem:[#allocation21_spill] sm:$0xff] %v3205_v60  ;;  %4911 = vst [vmem:[#allocation22_spill] sm:$0xff] %v3210_v61  ;;  %521 = vmatpush1.msra.mxu0 %v3170_v53  ;;  %592 = vmatpush1.msra.mxu1 %v3180_v55  ;;  %v3217_v63 = vld [vmem:[%s4716_s3 + $0x48] sm:$0xff]  ;;  %v3222_v30 = vld [vmem:[%s4716_s3 + $0x58] sm:$0xff]  ;;  %v4750_v55 = vmov 0.0   ;;  %vm2715_vm1 = vcmask 1041409  }
  0x1a   :  { %4912 = vst [vmem:[#allocation23_spill] sm:$0xff] %v3217_v63  ;;  %4913 = vst [vmem:[#allocation24_spill] sm:$0xff] %v3222_v30  ;;  %522 = vmatprep.subr.mxu0 %v3193_v58  ;;  %593 = vmatprep.subr.mxu1 %v3198_v59  ;;  %v3235_v49 = vld [vmem:[%s4716_s3 + $0x40] sm:$0xff]  ;;  %v3240_v50 = vld [vmem:[%s4716_s3 + $0x50] sm:$0xff]  ;;  %v3267_v58 = vsub.s32 %v67_v62, %v3117_v42  ;;  %v48_v53 = vcombine.high %v32_v57, %v4750_v55  ;;  %vm2717_vm2 = vcmask 1042434   ;;  %vm2719_vm3 = vcmask 1043459  }
  0x1b   :  { %4914 = vst [vmem:[#allocation25_spill] sm:$0xff] %v3225_v31  ;;  %4915 = vst [vmem:[#allocation26_spill] sm:$0xff] %v3228_v41  ;;  %523 = vmatpush1.msra.mxu0 %v3205_v60  ;;  %594 = vmatpush1.msra.mxu1 %v3210_v61  ;;  %v3247_v32 = vld [vmem:[%s4716_s3 + $0x28] sm:$0xff]  ;;  %v3252_v59 = vld [vmem:[%s4716_s3 + $0x38] sm:$0xff]  ;;  %v63_v62 = vcombine.low %v3225_v31, %v3228_v41  ;;  %v33_v42 = vcombine.high %v31_v56, %v4750_v55  ;;  %vm2721_vm4 = vcmask 1044484   ;;  %vm2723_vm5 = vcmask 1045509  }
  0x1c   :  { %4916 = vst [vmem:[#allocation27_spill] sm:$0xff] %v3235_v49  ;;  %4917 = vst [vmem:[#allocation28_spill] sm:$0xff] %v3240_v50  ;;  %524 = vmatprep.subr.mxu0 %v3217_v63  ;;  %595 = vmatprep.subr.mxu1 %v3222_v30  ;;  %v3259_v60 = vld [vmem:[%s4716_s3 + $0x20] sm:$0xff]  ;;  %v3264_v61 = vld [vmem:[%s4716_s3 + $0x30] sm:$0xff]  ;;  %v62_v41 = vrot.slane %v48_v53, %v3173_v54  ;;  %vm2725_vm6 = vcmask 1046534   ;;  %vm2727_vm7 = vcmask 1047559  }
  0x1d   :  { %4918 = vst [vmem:[#allocation29_spill] sm:$0xff] %v3247_v32  ;;  %4919 = vst [vmem:[#allocation30_spill] sm:$0xff] %v3252_v59  ;;  %525 = vmatpush1.msra.mxu0 %v3235_v49  ;;  %596 = vmatpush1.msra.mxu1 %v3240_v50  ;;  %v3274_v30 = vld [vmem:[%s4716_s3 + $0x8] sm:$0xff]  ;;  %v3279_v63 = vld [vmem:[%s4716_s3 + $0x18] sm:$0xff]  ;;  %v71_v56 = vrot.slane %v63_v62, %v3267_v58  ;;  %v47_v31 = vrot.slane %v33_v42, %v3173_v54  ;;  %s2773_s0 = sshll.u32 %s2848_s20, 4  ;;  %vm2765_vm8 = vcmask 58368   ;;  %s2774_s0 = int_to_ptr.vmem [resolvable:$true] %s2773_s0 }
  0x1e   :  { %4920 = vst [vmem:[#allocation31_spill] sm:$0xff] %v3259_v60  ;;  %4921 = vst [vmem:[#allocation32_spill] sm:$0xff] %v3264_v61  ;;  %526 = vmatprep.subr.mxu0 %v3247_v32  ;;  %597 = vmatprep.subr.mxu1 %v3252_v59  ;;  %v3290_v50 = vld [vmem:[%s4716_s3] sm:$0xff]  ;;  %v3297_v57 = vld [vmem:[%s4716_s3 + $0x10] sm:$0xff]  ;;  %s2822_s21 = scalar_lea.vmem %s2774_s0, 32  ;;  %p2827_p1 = scmp.lt.s32.totalorder %s2774_s0, %s2774_s0 }
  0x1f   :  { %4922 = vst [vmem:[#allocation33_spill] sm:$0xff] %v3267_v58  ;;  %4923 = vst [vmem:[#allocation34_spill] sm:$0xff] %v3274_v30  ;;  %527 = vmatpush1.msra.mxu0 %v3259_v60  ;;  %598 = vmatpush1.msra.mxu1 %v3264_v61  ;;  %v95_v62 = vcombine.high %v71_v56, %v4750_v55  ;;  %v80_v53 = vcombine.high %v47_v31, %v62_v41  ;;  %p2823_p0 = scmp.ne.s32.totalorder %s2774_s0, %s2822_s21  ;;  %p2828_p2 = scmp.lt.s32.totalorder %s2822_s21, %s2822_s21 }
  0x20   :  { %4924 = vst [vmem:[#allocation35_spill] sm:$0xff] %v3279_v63  ;;  %4925 = vst [vmem:[#allocation36_spill] sm:$0xff] %v3290_v50  ;;  %528 = vmatprep.subr.mxu0 %v3274_v30  ;;  %599 = vmatprep.subr.mxu1 %v3279_v63  ;;  %v4749_v30 = vmov 0  }
  0x21   :  { %4926 = vst [vmem:[#allocation37_spill] sm:$0xff] %v3297_v57  ;;  %529 = vmatpush1.msra.mxu0 %v3290_v50  ;;  %562 = vmatprep.mubr.f32.mxu0 %v4750_v55  ;;  %v79_v50 = vcombine.low %v47_v31, %v62_v41  ;;  %v4929_v31 = vld [vmem:[#allocation17_spill] sm:$0xff]  ;;  %v4930_v41 = vld [vmem:[#allocation18_spill] sm:$0xff]  ;;  %p2829_p3 = por %p2828_p2, %p2827_p1 }
  0x22   :  { %600 = vmatpush1.msra.mxu1 %v3297_v57  ;;  %633 = vmatprep.mubr.f32.mxu1 %v4750_v55 }
  0x23   :  { %563 = vmatmul.mubr.f32.vlgmr.msra.gmra.mxu0 %v4750_v55  ;;  %634 = vmatmul.mubr.f32.vlgmr.msra.gmra.mxu1 %v4750_v55  ;;  %v3321_v42 = vrot.slane %v79_v50, %v3267_v58  ;;  %v3332_v50 = vrot.slane %v80_v53, %v3267_v58  ;;  %v4933_v53 = vld [vmem:[#allocation21_spill] sm:$0xff]  ;;  %v4935_v55 = vld [vmem:[#allocation23_spill] sm:$0xff]  ;;  %p2830_p4 = pnand %p2829_p3, %p2823_p0 }
  0x24   :  { %2787 = vset.pattern.permute.xlu0 %v4749_v30  ;;  %808 = vmatprep.subr.mxu0 %v2897_v0  ;;  %v4934_v30 = vld [vmem:[#allocation22_spill] sm:$0xff] }
  0x25   :  { %102 = vperm.xlu0 %2787, %v71_v56   ;;  %879 = vmatprep.subr.mxu1 %v2902_v1  ;;  %4927 = vst [vmem:[#allocation38_spill] sm:$0xff] %v3321_v42  ;;  %4928 = vst [vmem:[#allocation39_spill] sm:$0xff] %v3332_v50  ;;  %v4931_v56 = vld [vmem:[#allocation19_spill] sm:$0xff] }
  0x26   :  { %809 = vmatpush1.msra.mxu0 %v2907_v2  ;;  %880 = vmatpush1.msra.mxu1 %v2914_v3  ;;  %v4938_v58 = vld [vmem:[#allocation34_spill] sm:$0xff] }
  0x27   :  { %810 = vmatprep.subr.mxu0 %v2919_v4  ;;  %881 = vmatprep.subr.mxu1 %v2924_v5 }
  0x28   :  { %811 = vmatpush1.msra.mxu0 %v2931_v6  ;;  %882 = vmatpush1.msra.mxu1 %v2936_v7 }
  0x29   :  { %107 = vperm.xlu0 %2787, %v95_v62   ;;  %812 = vmatprep.subr.mxu0 %v2941_v8  ;;  %v4932_v62 = vld [vmem:[#allocation20_spill] sm:$0xff] }
  0x2a   :  { %883 = vmatprep.subr.mxu1 %v2948_v9  ;;  %813 = vmatpush1.msra.mxu0 %v2953_v10 }
  0x2b   :  { %884 = vmatpush1.msra.mxu1 %v2958_v11  ;;  %814 = vmatprep.subr.mxu0 %v2965_v12 }
  0x2c   :  { %885 = vmatprep.subr.mxu1 %v2970_v13  ;;  %815 = vmatpush1.msra.mxu0 %v2977_v14 }
  0x2d   :  { %122 = vperm.xlu0 %2787, %v3321_v42   ;;  %886 = vmatpush1.msra.mxu1 %v2982_v15  ;;  %v4937_v42 = vld [vmem:[#allocation28_spill] sm:$0xff] }
  0x2e   :  { %816 = vmatprep.subr.mxu0 %v2989_v16  ;;  %887 = vmatprep.subr.mxu1 %v2994_v17 }
  0x2f   :  { %817 = vmatpush1.msra.mxu0 %v3001_v18  ;;  %888 = vmatpush1.msra.mxu1 %v3006_v19 }
  0x30   :  { %818 = vmatprep.subr.mxu0 %v3013_v20  ;;  %889 = vmatprep.subr.mxu1 %v3018_v21 }
  0x31   :  { %132 = vperm.xlu0 %2787, %v3332_v50   ;;  %819 = vmatpush1.msra.mxu0 %v3025_v22  ;;  %v4936_v50 = vld [vmem:[#allocation24_spill] sm:$0xff] }
  0x32   :  { %890 = vmatpush1.msra.mxu1 %v3030_v23  ;;  %820 = vmatprep.subr.mxu0 %v3037_v24 }
  0x33   :  { %891 = vmatprep.subr.mxu1 %v3042_v25  ;;  %821 = vmatpush1.msra.mxu0 %v3049_v26 }
  0x34   :  { %892 = vmatpush1.msra.mxu1 %v3054_v27  ;;  %822 = vmatprep.subr.mxu0 %v3061_v28 }
  0x35   :  { %893 = vmatprep.subr.mxu1 %v3066_v29  ;;  %823 = vmatpush1.msra.mxu0 %v3073_v33 }
  0x36   :  { %894 = vmatpush1.msra.mxu1 %v3078_v34  ;;  %824 = vmatprep.subr.mxu0 %v3085_v35 }
  0x37   :  { %895 = vmatprep.subr.mxu1 %v3090_v36  ;;  %825 = vmatpush1.msra.mxu0 %v3097_v37 }
  0x38   :  { %896 = vmatpush1.msra.mxu1 %v3102_v38  ;;  %826 = vmatprep.subr.mxu0 %v3109_v39 }
  0x39   :  { %897 = vmatprep.subr.mxu1 %v3114_v40  ;;  %827 = vmatpush1.msra.mxu0 %v3124_v43 }
  0x3a   :  { %898 = vmatpush1.msra.mxu1 %v3129_v44  ;;  %828 = vmatprep.subr.mxu0 %v3136_v45 }
  0x3b   :  { %899 = vmatprep.subr.mxu1 %v3141_v46  ;;  %829 = vmatpush1.msra.mxu0 %v3148_v47 }
  0x3c   :  { %900 = vmatpush1.msra.mxu1 %v3153_v48  ;;  %830 = vmatprep.subr.mxu0 %v3160_v51 }
  0x3d   :  { %901 = vmatprep.subr.mxu1 %v3165_v52  ;;  %831 = vmatpush1.msra.mxu0 %v4929_v31 }
  0x3e   :  { %902 = vmatpush1.msra.mxu1 %v4930_v41  ;;  %832 = vmatprep.subr.mxu0 %v4931_v56 }
  0x3f   :  { %903 = vmatprep.subr.mxu1 %v4932_v62  ;;  %833 = vmatpush1.msra.mxu0 %v4933_v53 }
  0x40   :  { %904 = vmatpush1.msra.mxu1 %v4934_v30  ;;  %834 = vmatprep.subr.mxu0 %v4935_v55  ;;  %v4939_v30 = vld [vmem:[#allocation36_spill] sm:$0xff]  ;;  %v4940_v55 = vmov 0.0  }
  0x41   :  { %905 = vmatprep.subr.mxu1 %v4936_v50  ;;  %835 = vmatpush1.msra.mxu0 %v3235_v49 }
  0x42   :  { %906 = vmatpush1.msra.mxu1 %v4937_v42  ;;  %836 = vmatprep.subr.mxu0 %v3247_v32  ;;  %v4941_v42 = vmov 0  }
  0x43   :  { %907 = vmatprep.subr.mxu1 %v3252_v59  ;;  %837 = vmatpush1.msra.mxu0 %v3259_v60  ;;  %v4942_v60 = vld [vmem:[#allocation8_spill] sm:$0xff] }
  0x44   :  { %908 = vmatpush1.msra.mxu1 %v3264_v61  ;;  %838 = vmatprep.subr.mxu0 %v4938_v58  ;;  %v143_v61 = vsub.s32 0, %v4942_v60  ;;  %v147_v58 = vsub.s32 1, %v4942_v60 }
  0x45   :  { %909 = vmatprep.subr.mxu1 %v3279_v63  ;;  %839 = vmatpush1.msra.mxu0 %v4939_v30  ;;  %v151_v63 = vsub.s32 2, %v4942_v60  ;;  %v155_v30 = vsub.s32 3, %v4942_v60 }
  0x46   :  { %872 = vmatprep.mubr.f32.mxu0 %v4940_v55  ;;  %910 = vmatpush1.msra.mxu1 %v3297_v57  ;;  %v99_v57 = vld [vmem:[%s4714_s1] sm:$0xf] }
  0x47   :  { %943 = vmatprep.mubr.f32.mxu1 %v4940_v55  ;;  %2788 = vset.pattern.permute.xlu1 %v4941_v42  ;;  %v3396_v59 = vrot.slane %v99_v57, %v143_v61  ;;  %v3398_v55 = vrot.slane %v99_v57, %v147_v58  ;;  %v3400_v42 = vrot.slane %v99_v57, %v151_v63 }
  0x48   :  { %1077 = vmatprep.subr.mxu0 %v2897_v0  ;;  %1148 = vmatprep.subr.mxu1 %v2902_v1  ;;  %v3402_v0 = vrot.slane %v99_v57, %v155_v30  ;;  %v193_v1 = vld [vmem:[%s4715_s2] sm:$0xf] }
  0x49   :  { %4943 = vst [vmem:[#allocation40_spill] sm:$0xff] %v3396_v59  ;;  %4944 = vst [vmem:[#allocation41_spill] sm:$0xff] %v3398_v55  ;;  %v3407_v32 = vrot.slane %v193_v1, %v143_v61  ;;  %v3409_v49 = vrot.slane %v193_v1, %v147_v58  ;;  %v3411_v60 = vrot.slane %v193_v1, %v151_v63 }
  0x4a   :  { %4945 = vst [vmem:[#allocation42_spill] sm:$0xff] %v3400_v42  ;;  %v3413_v50 = vrot.slane %v193_v1, %v155_v30 }
  0x4b   :  { %4946 = vst [vmem:[#allocation43_spill] sm:$0xff] %v3407_v32  ;;  %4947 = vst [vmem:[#allocation44_spill] sm:$0xff] %v3409_v49 }
  0x4c   :  { %4948 = vst [vmem:[#allocation45_spill] sm:$0xff] %v3411_v60 }
  0xa0   :  { %v103_v53 = vpop.permute.xlu0 %102 }
  0xa1   :  { %v161_v62 = vmul.f32 %v3396_v59, %v103_v53  ;;  %v162_v56 = vmul.f32 %v3398_v55, %v103_v53  ;;  %v163_v57 = vmul.f32 %v3400_v42, %v103_v53  ;;  %v164_v41 = vmul.f32 %v3402_v0, %v103_v53 }
  0xa3   :  { %v215_v31 = vadd.f32 %v3407_v32, %v161_v62  ;;  %v216_v52 = vadd.f32 %v3409_v49, %v162_v56  ;;  %v217_v51 = vadd.f32 %v3411_v60, %v163_v57  ;;  %v218_v48 = vadd.f32 %v3413_v50, %v164_v41 }
  0xa5   :  { %v279_v47 = vcombine.low %v215_v31, %v216_v52  ;;  %v280_v1 = vcombine.low %v217_v51, %v218_v48  ;;  %v431_v48 = vld [vmem:[%s4717_s4] sm:$0xf] }
  0xa6   :  { %v3430_v51 = vrot.slane %v431_v48, %v143_v61 }
  0xa7   :  { %v287_v59 = vrot.slane %v279_v47, %v3173_v54  ;;  %v294_v55 = vrot.slane %v280_v1, %v3173_v54  ;;  %v432_v47 = vld [vmem:[%s4718_s5] sm:$0xf] }
  0xa8   :  { %v3446_v41 = vrot.slane %v432_v47, %v151_v63 }
  0xa9   :  { %v295_v32 = vcombine.low %v287_v59, %v294_v55  ;;  %v3442_v55 = vrot.slane %v432_v47, %v147_v58 }
  0xe3   :  { %v564_v46 = vpop.f32.mrf.mxu0  ;;  %v635_v45 = vpop.f32.mrf.mxu1 }
  0xe5   :  { %v566_v44 = vpop.f32.mrf.mxu0  ;;  %v637_v42 = vpop.f32.mrf.mxu1 }
  0xe6   :  { %v644_v43 = vcombine.low %v564_v46, %v566_v44  ;;  %v645_v53 = vcombine.low %v635_v45, %v637_v42  ;;  %v3435_v45 = vrot.slane %v431_v48, %v147_v58  ;;  %v3438_v46 = vrot.slane %v431_v48, %v151_v63 }
  0xe8   :  { %v652_v62 = vrot.slane %v644_v43, %v3173_v54  ;;  %v659_v56 = vrot.slane %v645_v53, %v3173_v54 }
  0xea   :  { %v660_v57 = vcombine.low %v652_v62, %v659_v56 }
  0xec   :  { %v662_v60 = vadd.f32 %v660_v57, %v295_v32  ;;  %v3440_v32 = vrot.slane %v432_v47, %v143_v61 }
  0xee   :  { %2789 = vtanh.f32 %v662_v60  ;;  %4949 = vst [vmem:[#allocation46_spill] sm:$0xff] %v3440_v32 }
  0xfb   :  { %v2790_v44 = vpop.eup %2789 }
  0xfc   :  { %v693_v43 = vrot.slane %v2790_v44, %v3173_v54  ;;  %v686_v52 = vcombine.high %v2790_v44, %v2790_v44  ;;  %v3456_v44 = vrot.slane %v431_v48, %v155_v30  ;;  %v4980_v48 = vld [vmem:[#allocation38_spill] sm:$0xff] }
  0xfe   :  { %v701_v59 = vcombine.high %v693_v43, %v693_v43  ;;  %v707_v60 = vmul.f32 %v693_v43, %v3430_v51  ;;  %v700_v31 = vrot.slane %v686_v52, %v3173_v54  ;;  %v3459_v52 = vrot.slane %v432_v47, %v155_v30  ;;  %v3473_v30 = vld [vmem:[%s4719_s6] ss:$0 sm:$0xff] }
 0x100   :  { %v708_v42 = vmul.f32 %v701_v59, %v3435_v45  ;;  %v709_v1 = vmul.f32 %v700_v31, %v3438_v46  ;;  %v732_v53 = vadd.f32 %v3440_v32, %v707_v60  ;;  %v702_v63 = vcombine.high %v700_v31, %v700_v31 }
 0x102   :  { %v733_v62 = vadd.f32 %v3442_v55, %v708_v42  ;;  %v734_v61 = vadd.f32 %v3446_v41, %v709_v1  ;;  %v710_v43 = vmul.f32 %v702_v63, %v3456_v44  ;;  %v108_v42 = vpop.permute.xlu0 %107  ;;  %v4982_v1 = vld [vmem:[#allocation40_spill] sm:$0xff] }
 0x103   :  { %v168_v63 = vmul.f32 %v3402_v0, %v108_v42 }
 0x104   :  { %v736_v56 = vmul.f32 0.0, %v733_v62  ;;  %v737_v58 = vmul.f32 %v734_v61, %v732_v53  ;;  %v735_v59 = vadd.f32 %v3459_v52, %v710_v43  ;;  %v165_v53 = vmul.f32 %v4982_v1, %v108_v42  ;;  %v4983_v62 = vld [vmem:[#allocation41_spill] sm:$0xff]  ;;  %v4985_v43 = vld [vmem:[#allocation43_spill] sm:$0xff] }
 0x105   :  { %v166_v61 = vmul.f32 %v4983_v62, %v108_v42 }
 0x106   :  { %v3453_v57 = vadd.f32 %v737_v58, %v736_v56  ;;  %v4984_v56 = vld [vmem:[#allocation42_spill] sm:$0xff] }
 0x107   :  { %v167_v58 = vmul.f32 %v4984_v56, %v108_v42 }
 0x108   :  { %2791 = vtanh.f32 %v3453_v57 }
 0x115   :  { %v2792_v60 = vpop.eup %2791 }
 0x116   :  { %v740_v32 = vmul.f32 %v2792_v60, %v735_v59  ;;  %v219_v59 = vadd.f32 %v4985_v43, %v165_v53  ;;  %v220_v60 = vadd.f32 %v3409_v49, %v166_v61  ;;  %v3574_v53 = vld [vmem:[%s4716_s3 + $0x1e8] sm:$0xff]  ;;  %v3579_v61 = vld [vmem:[%s4716_s3 + $0x1f8] sm:$0xff] }
 0x118   :  { %741 = vst [vmem:[#allocation3] sm:$0x3] %v740_v32  ;;  %873 = vmatmul.mubr.f32.vlgmr.msra.gmra.mxu0 %v740_v32  ;;  %944 = vmatmul.mubr.f32.vlgmr.msra.gmra.mxu1 %v740_v32  ;;  %v4981_v32 = vld [vmem:[#allocation39_spill] sm:$0xff] }
 0x119   :  { %1078 = vmatpush1.msra.mxu0 %v2907_v2  ;;  %1149 = vmatpush1.msra.mxu1 %v2914_v3 }
 0x11a   :  { %1079 = vmatprep.subr.mxu0 %v2919_v4  ;;  %1150 = vmatprep.subr.mxu1 %v2924_v5  ;;  %v4950_v5 = vld [vmem:[#allocation9_spill] sm:$0xff] }
 0x11b   :  { %1080 = vmatpush1.msra.mxu0 %v2931_v6  ;;  %1151 = vmatpush1.msra.mxu1 %v2936_v7  ;;  %v4951_v6 = vld [vmem:[#allocation10_spill] sm:$0xff]  ;;  %v4952_v7 = vld [vmem:[#allocation11_spill] sm:$0xff]  ;;  %4988 = vst [vmem:[#allocation9_spill] sm:$0xff] %v3574_v53 }
 0x11c   :  { %1081 = vmatprep.subr.mxu0 %v2941_v8  ;;  %1152 = vmatprep.subr.mxu1 %v2948_v9  ;;  %v4953_v8 = vld [vmem:[#allocation12_spill] sm:$0xff]  ;;  %v4954_v9 = vld [vmem:[#allocation13_spill] sm:$0xff]  ;;  %4989 = vst [vmem:[#allocation10_spill] sm:$0xff] %v3579_v61 }
 0x11d   :  { %1082 = vmatpush1.msra.mxu0 %v2953_v10  ;;  %1153 = vmatpush1.msra.mxu1 %v2958_v11  ;;  %v4955_v10 = vld [vmem:[#allocation14_spill] sm:$0xff]  ;;  %v4956_v11 = vld [vmem:[#allocation15_spill] sm:$0xff] }
 0x11e   :  { %1083 = vmatprep.subr.mxu0 %v2965_v12  ;;  %1154 = vmatprep.subr.mxu1 %v2970_v13  ;;  %v4957_v12 = vld [vmem:[#allocation16_spill] sm:$0xff]  ;;  %v4958_v13 = vld [vmem:[#allocation17_spill] sm:$0xff] }
 0x11f   :  { %v2625_v2 = vld [vmem:[#allocation3] sm:$0x3]  ;;  %1084 = vmatpush1.msra.mxu0 %v2977_v14  ;;  %1155 = vmatpush1.msra.mxu1 %v2982_v15  ;;  %v4959_v14 = vld [vmem:[#allocation18_spill] sm:$0xff]  ;;  %v4960_v15 = vld [vmem:[#allocation19_spill] sm:$0xff] }
 0x120   :  { %v2640_v3 = vmul.f32 %v3473_v30, %v2625_v2  ;;  %1085 = vmatprep.subr.mxu0 %v2989_v16  ;;  %1156 = vmatprep.subr.mxu1 %v2994_v17  ;;  %v4961_v16 = vld [vmem:[#allocation20_spill] sm:$0xff]  ;;  %v4962_v17 = vld [vmem:[#allocation21_spill] sm:$0xff] }
 0x121   :  { %1086 = vmatpush1.msra.mxu0 %v3001_v18  ;;  %1157 = vmatpush1.msra.mxu1 %v3006_v19  ;;  %v4963_v18 = vld [vmem:[#allocation22_spill] sm:$0xff]  ;;  %v4964_v19 = vld [vmem:[#allocation23_spill] sm:$0xff]  ;;  %v4986_v2 = vld [vmem:[#allocation45_spill] sm:$0xff] }
 0x122   :  { %v2649_v4 = vsel %vm2648_vm0, %v2640_v3, 0.0  ;;  %1087 = vmatprep.subr.mxu0 %v3013_v20  ;;  %1158 = vmatprep.subr.mxu1 %v3018_v21  ;;  %v4965_v20 = vld [vmem:[#allocation24_spill] sm:$0xff]  ;;  %v4966_v21 = vld [vmem:[#allocation27_spill] sm:$0xff]  ;;  %v221_v3 = vadd.f32 %v4986_v2, %v167_v58  ;;  %v3586_v58 = vld [vmem:[%s4716_s3 + $0x1e0] sm:$0xff] }
 0x123   :  { %2650 = vadd.xlane.f32.xlu0 %v2649_v4  ;;  %1088 = vmatpush1.msra.mxu0 %v3025_v22  ;;  %v4967_v22 = vld [vmem:[#allocation28_spill] sm:$0xff]  ;;  %v222_v4 = vadd.f32 %v3413_v50, %v168_v63 }
 0x124   :  { %1159 = vmatpush1.msra.mxu1 %v3030_v23  ;;  %1089 = vmatprep.subr.mxu0 %v3037_v24  ;;  %v4968_v23 = vld [vmem:[#allocation29_spill] sm:$0xff]  ;;  %v4969_v24 = vld [vmem:[#allocation30_spill] sm:$0xff]  ;;  %v3591_v63 = vld [vmem:[%s4716_s3 + $0x1f0] sm:$0xff] }
 0x125   :  { %1160 = vmatprep.subr.mxu1 %v3042_v25  ;;  %1090 = vmatpush1.msra.mxu0 %v3049_v26  ;;  %v4970_v25 = vld [vmem:[#allocation31_spill] sm:$0xff]  ;;  %v4971_v26 = vld [vmem:[#allocation32_spill] sm:$0xff] }
 0x126   :  { %1161 = vmatpush1.msra.mxu1 %v3054_v27  ;;  %1091 = vmatprep.subr.mxu0 %v3061_v28  ;;  %v4972_v27 = vld [vmem:[#allocation34_spill] sm:$0xff]  ;;  %v4973_v28 = vld [vmem:[#allocation35_spill] sm:$0xff] }
 0x127   :  { %1162 = vmatprep.subr.mxu1 %v3066_v29  ;;  %1092 = vmatpush1.msra.mxu0 %v3073_v33  ;;  %v4974_v29 = vld [vmem:[#allocation36_spill] sm:$0xff]  ;;  %v4975_v33 = vmov 0.0  }
 0x128   :  { %1163 = vmatpush1.msra.mxu1 %v3078_v34  ;;  %1093 = vmatprep.subr.mxu0 %v3085_v35  ;;  %v4976_v34 = vld [vmem:[#allocation37_spill] sm:$0xff]  ;;  %v4977_v35 = vld [vmem:[#allocation26_spill] sm:$0xff]  ;;  %v97_v47 = vcombine.high %v4980_v48, %v4975_v33  ;;  %v98_v31 = vcombine.high %v4981_v32, %v4975_v33 }
 0x129   :  { %1164 = vmatprep.subr.mxu1 %v3090_v36  ;;  %1094 = vmatpush1.msra.mxu0 %v3097_v37  ;;  %v4978_v36 = vld [vmem:[#allocation25_spill] sm:$0xff] }
 0x12a   :  { %1165 = vmatpush1.msra.mxu1 %v3102_v38  ;;  %1095 = vmatprep.subr.mxu0 %v3109_v39  ;;  %v64_v37 = vcombine.high %v4978_v36, %v4977_v35  ;;  %v4979_v38 = vld [vmem:[#allocation33_spill] sm:$0xff] }
 0x12b   :  { %1166 = vmatprep.subr.mxu1 %v3114_v40  ;;  %1096 = vmatpush1.msra.mxu0 %v4950_v5  ;;  %v296_v5 = vcombine.low %v219_v59, %v220_v60  ;;  %v3598_v59 = vld [vmem:[%s4716_s3 + $0x1c8] sm:$0xff]  ;;  %v3603_v60 = vld [vmem:[%s4716_s3 + $0x1d8] sm:$0xff] }
 0x12c   :  { %1167 = vmatpush1.msra.mxu1 %v4951_v6  ;;  %1097 = vmatprep.subr.mxu0 %v4952_v7  ;;  %v78_v39 = vrot.slane %v64_v37, %v4979_v38  ;;  %v297_v6 = vcombine.low %v221_v3, %v222_v4  ;;  %v3610_v3 = vld [vmem:[%s4716_s3 + $0x1c0] sm:$0xff]  ;;  %v3615_v4 = vld [vmem:[%s4716_s3 + $0x1d0] sm:$0xff] }
 0x12d   :  { %1168 = vmatprep.subr.mxu1 %v4953_v8  ;;  %1098 = vmatpush1.msra.mxu0 %v4954_v9 }
 0x12e   :  { %1169 = vmatpush1.msra.mxu1 %v4955_v10  ;;  %1099 = vmatprep.subr.mxu0 %v4956_v11  ;;  %v96_v40 = vcombine.high %v78_v39, %v4975_v33 }
 0x12f   :  { %1170 = vmatprep.subr.mxu1 %v4957_v12  ;;  %1100 = vmatpush1.msra.mxu0 %v4958_v13  ;;  %v304_v12 = vrot.slane %v296_v5, %v3173_v54  ;;  %v311_v13 = vrot.slane %v297_v6, %v3173_v54  ;;  %v3622_v5 = vld [vmem:[%s4716_s3 + $0x1a8] sm:$0xff]  ;;  %v3627_v6 = vld [vmem:[%s4716_s3 + $0x1b8] sm:$0xff] }
 0x130   :  { %1171 = vmatpush1.msra.mxu1 %v4959_v14  ;;  %1101 = vmatprep.subr.mxu0 %v4960_v15 }
 0x131   :  { %1172 = vmatprep.subr.mxu1 %v4961_v16  ;;  %1102 = vmatpush1.msra.mxu0 %v4962_v17  ;;  %v312_v17 = vcombine.low %v304_v12, %v311_v13  ;;  %v3663_v12 = vld [vmem:[%s4716_s3 + $0x190] sm:$0xff]  ;;  %v3670_v13 = vld [vmem:[%s4716_s3 + $0x168] sm:$0xff] }
 0x132   :  { %1173 = vmatpush1.msra.mxu1 %v4963_v18  ;;  %1103 = vmatprep.subr.mxu0 %v4964_v19 }
 0x133   :  { %1174 = vmatprep.subr.mxu1 %v4965_v20  ;;  %1104 = vmatpush1.msra.mxu0 %v4966_v21 }
 0x134   :  { %1175 = vmatpush1.msra.mxu1 %v4967_v22  ;;  %1105 = vmatprep.subr.mxu0 %v4968_v23 }
 0x135   :  { %1176 = vmatprep.subr.mxu1 %v4969_v24  ;;  %1106 = vmatpush1.msra.mxu0 %v4970_v25 }
 0x136   :  { %1177 = vmatpush1.msra.mxu1 %v4971_v26  ;;  %1107 = vmatprep.subr.mxu0 %v4972_v27 }
 0x137   :  { %1178 = vmatprep.subr.mxu1 %v4973_v28  ;;  %1108 = vmatpush1.msra.mxu0 %v4974_v29  ;;  %v4987_v29 = vld [vmem:[#allocation46_spill] sm:$0xff] }
 0x138   :  { %1141 = vmatprep.mubr.f32.mxu0 %v4975_v33  ;;  %1179 = vmatpush1.msra.mxu1 %v4976_v34 }
 0x139   :  { %1212 = vmatprep.mubr.f32.mxu1 %v4975_v33  ;;  %112 = vperm.xlu1 %2788, %v78_v39  }
 0x13a   :  { %1346 = vmatprep.subr.mxu0 %v3574_v53  ;;  %1417 = vmatprep.subr.mxu1 %v3579_v61 }
 0x13d   :  { %117 = vperm.xlu1 %2788, %v96_v40  }
 0x141   :  { %127 = vperm.xlu1 %2788, %v97_v47  }
 0x145   :  { %137 = vperm.xlu1 %2788, %v98_v31  }
 0x1d8   :  { %v874_v7 = vpop.f32.mrf.mxu0  ;;  %v945_v8 = vpop.f32.mrf.mxu1 }
 0x1da   :  { %v876_v9 = vpop.f32.mrf.mxu0  ;;  %v947_v10 = vpop.f32.mrf.mxu1 }
 0x1db   :  { %v954_v11 = vcombine.low %v874_v7, %v876_v9  ;;  %v955_v14 = vcombine.low %v945_v8, %v947_v10  ;;  %v3634_v7 = vld [vmem:[%s4716_s3 + $0x1a0] sm:$0xff]  ;;  %v3639_v8 = vld [vmem:[%s4716_s3 + $0x1b0] sm:$0xff]  ;;  %v3646_v9 = vld [vmem:[%s4716_s3 + $0x188] sm:$0xff] }
 0x1dc   :  { %v3651_v10 = vld [vmem:[%s4716_s3 + $0x198] sm:$0xff] }
 0x1dd   :  { %v962_v15 = vrot.slane %v954_v11, %v3173_v54  ;;  %v969_v16 = vrot.slane %v955_v14, %v3173_v54  ;;  %v3658_v11 = vld [vmem:[%s4716_s3 + $0x180] sm:$0xff]  ;;  %v3675_v14 = vld [vmem:[%s4716_s3 + $0x178] sm:$0xff] }
 0x1df   :  { %v970_v18 = vcombine.low %v962_v15, %v969_v16  ;;  %v3682_v15 = vld [vmem:[%s4716_s3 + $0x160] sm:$0xff]  ;;  %v3687_v16 = vld [vmem:[%s4716_s3 + $0x170] sm:$0xff] }
 0x1e1   :  { %v972_v19 = vadd.f32 %v970_v18, %v312_v17  ;;  %v3694_v17 = vld [vmem:[%s4716_s3 + $0x148] sm:$0xff]  ;;  %v3699_v18 = vld [vmem:[%s4716_s3 + $0x158] sm:$0xff] }
 0x1e3   :  { %2793 = vtanh.f32 %v972_v19  ;;  %v3706_v19 = vld [vmem:[%s4716_s3 + $0x140] sm:$0xff] }
 0x1f0   :  { %v2794_v20 = vpop.eup %2793 }
 0x1f1   :  { %v982_v21 = vrot.slane %v2794_v20, %v3173_v54  ;;  %v975_v22 = vcombine.high %v2794_v20, %v2794_v20  ;;  %v3711_v20 = vld [vmem:[%s4716_s3 + $0x150] sm:$0xff] }
 0x1f3   :  { %v990_v23 = vcombine.high %v982_v21, %v982_v21  ;;  %v996_v24 = vmul.f32 %v982_v21, %v3430_v51  ;;  %v989_v25 = vrot.slane %v975_v22, %v3173_v54  ;;  %v3716_v21 = vld [vmem:[%s4716_s3 + $0x128] sm:$0xff]  ;;  %v3723_v22 = vld [vmem:[%s4716_s3 + $0x138] sm:$0xff] }
 0x1f5   :  { %v997_v26 = vmul.f32 %v990_v23, %v3435_v45  ;;  %v998_v27 = vmul.f32 %v989_v25, %v3438_v46  ;;  %v1000_v34 = vadd.f32 %v996_v24, %v4987_v29  ;;  %v991_v39 = vcombine.high %v989_v25, %v989_v25  ;;  %v3728_v23 = vld [vmem:[%s4716_s3 + $0x120] sm:$0xff]  ;;  %v3733_v24 = vld [vmem:[%s4716_s3 + $0x130] sm:$0xff]  ;;  %v3740_v25 = vld [vmem:[%s4716_s3 + $0x108] sm:$0xff] }
 0x1f7   :  { %v1001_v28 = vadd.f32 %v997_v26, %v3442_v55  ;;  %v1002_v35 = vadd.f32 %v998_v27, %v3446_v41  ;;  %v999_v40 = vmul.f32 %v991_v39, %v3456_v44  ;;  %v3745_v26 = vld [vmem:[%s4716_s3 + $0x118] sm:$0xff]  ;;  %v3750_v27 = vld [vmem:[%s4716_s3 + $0x100] sm:$0xff]  ;;  %v3786_v39 = vld [vmem:[%s4716_s3 + $0xc8] sm:$0xff] }
 0x1f8   :  { %4994 = vst [vmem:[#allocation15_spill] sm:$0xff] %v3786_v39 }
 0x1f9   :  { %v1004_v36 = vmul.f32 %v1001_v28, %v3453_v57  ;;  %v1005_v37 = vmul.f32 %v1002_v35, %v1000_v34  ;;  %v1003_v48 = vadd.f32 %v999_v40, %v3459_v52  ;;  %v3757_v28 = vld [vmem:[%s4716_s3 + $0x110] sm:$0xff]  ;;  %v3762_v34 = vld [vmem:[%s4716_s3 + $0xe8] sm:$0xff]  ;;  %v3767_v35 = vld [vmem:[%s4716_s3 + $0xf8] sm:$0xff] }
 0x1fa   :  { %4990 = vst [vmem:[#allocation11_spill] sm:$0xff] %v3762_v34  ;;  %4991 = vst [vmem:[#allocation12_spill] sm:$0xff] %v3767_v35  ;;  %v3791_v40 = vld [vmem:[%s4716_s3 + $0xd8] sm:$0xff] }
 0x1fb   :  { %v3562_v38 = vadd.f32 %v1005_v37, %v1004_v36  ;;  %v3774_v36 = vld [vmem:[%s4716_s3 + $0xe0] sm:$0xff]  ;;  %v3779_v37 = vld [vmem:[%s4716_s3 + $0xf0] sm:$0xff]  ;;  %4995 = vst [vmem:[#allocation16_spill] sm:$0xff] %v3791_v40 }
 0x1fc   :  { %4992 = vst [vmem:[#allocation13_spill] sm:$0xff] %v3774_v36  ;;  %4993 = vst [vmem:[#allocation14_spill] sm:$0xff] %v3779_v37 }
 0x1fd   :  { %2795 = vtanh.f32 %v3562_v38 }
 0x20a   :  { %v2796_v47 = vpop.eup %2795 }
 0x20b   :  { %v1008_v32 = vmul.f32 %v2796_v47, %v1003_v48  ;;  %v3798_v48 = vld [vmem:[%s4716_s3 + $0xc0] sm:$0xff]  ;;  %v3803_v47 = vld [vmem:[%s4716_s3 + $0xd0] sm:$0xff] }
 0x20c   :  { %4996 = vst [vmem:[#allocation17_spill] sm:$0xff] %v3798_v48  ;;  %4997 = vst [vmem:[#allocation18_spill] sm:$0xff] %v3803_v47 }
 0x20d   :  { %1010 = vst [vmem:[#allocation3 + $0x2] sm:$0x3] %v1008_v32  ;;  %1142 = vmatmul.mubr.f32.vlgmr.msra.gmra.mxu0 %v1008_v32  ;;  %1213 = vmatmul.mubr.f32.vlgmr.msra.gmra.mxu1 %v1008_v32  ;;  %v3810_v32 = vld [vmem:[%s4716_s3 + $0xa8] sm:$0xff] }
 0x20e   :  { %1410 = vmatprep.mubr.f32.mxu0 %v4975_v33  ;;  %1481 = vmatprep.mubr.f32.mxu1 %v4975_v33  ;;  %4998 = vst [vmem:[#allocation19_spill] sm:$0xff] %v3810_v32  ;;  %v3834_v33 = vld [vmem:[%s4716_s3 + $0x88] sm:$0xff] }
 0x20f   :  { %1347 = vmatpush1.msra.mxu0 %v3586_v58  ;;  %1418 = vmatpush1.msra.mxu1 %v3591_v63  ;;  %5002 = vst [vmem:[#allocation23_spill] sm:$0xff] %v3834_v33 }
 0x210   :  { %1348 = vmatprep.subr.mxu0 %v3598_v59  ;;  %1419 = vmatprep.subr.mxu1 %v3603_v60 }
 0x211   :  { %1349 = vmatpush1.msra.mxu0 %v3610_v3  ;;  %1420 = vmatpush1.msra.mxu1 %v3615_v4 }
 0x212   :  { %1350 = vmatprep.subr.mxu0 %v3622_v5  ;;  %1421 = vmatprep.subr.mxu1 %v3627_v6 }
 0x213   :  { %1351 = vmatpush1.msra.mxu0 %v3634_v7  ;;  %1422 = vmatpush1.msra.mxu1 %v3639_v8 }
 0x214   :  { %v2626_v57 = vld [vmem:[#allocation3 + $0x2] sm:$0x3]  ;;  %1352 = vmatprep.subr.mxu0 %v3646_v9  ;;  %1423 = vmatprep.subr.mxu1 %v3651_v10 }
 0x215   :  { %v2641_v31 = vmul.f32 %v3473_v30, %v2626_v57  ;;  %1353 = vmatpush1.msra.mxu0 %v3658_v11  ;;  %1424 = vmatpush1.msra.mxu1 %v3663_v12  ;;  %v3815_v57 = vld [vmem:[%s4716_s3 + $0xb8] sm:$0xff] }
 0x216   :  { %1354 = vmatprep.subr.mxu0 %v3670_v13  ;;  %1425 = vmatprep.subr.mxu1 %v3675_v14  ;;  %4999 = vst [vmem:[#allocation20_spill] sm:$0xff] %v3815_v57 }
 0x217   :  { %v2652_v42 = vsel %vm2648_vm0, %v2641_v31, 0.0  ;;  %1355 = vmatpush1.msra.mxu0 %v3682_v15  ;;  %1426 = vmatpush1.msra.mxu1 %v3687_v16  ;;  %v3822_v31 = vld [vmem:[%s4716_s3 + $0xa0] sm:$0xff] }
 0x218   :  { %2653 = vadd.xlane.f32.xlu1 %v2652_v42  ;;  %1356 = vmatprep.subr.mxu0 %v3694_v17  ;;  %5000 = vst [vmem:[#allocation21_spill] sm:$0xff] %v3822_v31  ;;  %v3827_v42 = vld [vmem:[%s4716_s3 + $0xb0] sm:$0xff] }
 0x219   :  { %1427 = vmatprep.subr.mxu1 %v3699_v18  ;;  %1357 = vmatpush1.msra.mxu0 %v3706_v19  ;;  %5001 = vst [vmem:[#allocation22_spill] sm:$0xff] %v3827_v42 }
 0x21a   :  { %1428 = vmatpush1.msra.mxu1 %v3711_v20  ;;  %1358 = vmatprep.subr.mxu0 %v3716_v21 }
 0x21b   :  { %1429 = vmatprep.subr.mxu1 %v3723_v22  ;;  %1359 = vmatpush1.msra.mxu0 %v3728_v23 }
 0x21c   :  { %1430 = vmatpush1.msra.mxu1 %v3733_v24  ;;  %1360 = vmatprep.subr.mxu0 %v3740_v25 }
 0x21d   :  { %1431 = vmatprep.subr.mxu1 %v3745_v26  ;;  %1361 = vmatpush1.msra.mxu0 %v3750_v27 }
 0x21e   :  { %1432 = vmatpush1.msra.mxu1 %v3757_v28  ;;  %1362 = vmatprep.subr.mxu0 %v3762_v34 }
 0x21f   :  { %1433 = vmatprep.subr.mxu1 %v3767_v35  ;;  %1363 = vmatpush1.msra.mxu0 %v3774_v36 }
 0x220   :  { %1434 = vmatpush1.msra.mxu1 %v3779_v37  ;;  %1364 = vmatprep.subr.mxu0 %v3786_v39 }
 0x221   :  { %1435 = vmatprep.subr.mxu1 %v3791_v40  ;;  %1365 = vmatpush1.msra.mxu0 %v3798_v48  ;;  %v3839_v40 = vld [vmem:[%s4716_s3 + $0x98] sm:$0xff]  ;;  %v3846_v48 = vld [vmem:[%s4716_s3 + $0x80] sm:$0xff] }
 0x222   :  { %1436 = vmatpush1.msra.mxu1 %v3803_v47  ;;  %5003 = vst [vmem:[#allocation24_spill] sm:$0xff] %v3839_v40  ;;  %1366 = vmatprep.subr.mxu0 %v3810_v32  ;;  %5004 = vst [vmem:[#allocation27_spill] sm:$0xff] %v3846_v48  ;;  %v3851_v47 = vld [vmem:[%s4716_s3 + $0x90] sm:$0xff]  ;;  %v3858_v32 = vld [vmem:[%s4716_s3 + $0x68] sm:$0xff] }
 0x223   :  { %1437 = vmatprep.subr.mxu1 %v3815_v57  ;;  %5005 = vst [vmem:[#allocation28_spill] sm:$0xff] %v3851_v47  ;;  %1367 = vmatpush1.msra.mxu0 %v3822_v31  ;;  %5006 = vst [vmem:[#allocation29_spill] sm:$0xff] %v3858_v32  ;;  %v3863_v57 = vld [vmem:[%s4716_s3 + $0x78] sm:$0xff]  ;;  %v3870_v31 = vld [vmem:[%s4716_s3 + $0x60] sm:$0xff] }
 0x224   :  { %1438 = vmatpush1.msra.mxu1 %v3827_v42  ;;  %5007 = vst [vmem:[#allocation30_spill] sm:$0xff] %v3863_v57  ;;  %1368 = vmatprep.subr.mxu0 %v3834_v33  ;;  %5008 = vst [vmem:[#allocation31_spill] sm:$0xff] %v3870_v31  ;;  %v3875_v42 = vld [vmem:[%s4716_s3 + $0x70] sm:$0xff]  ;;  %v3882_v33 = vld [vmem:[%s4716_s3 + $0x48] sm:$0xff] }
 0x225   :  { %1439 = vmatprep.subr.mxu1 %v3839_v40  ;;  %5009 = vst [vmem:[#allocation32_spill] sm:$0xff] %v3875_v42  ;;  %1369 = vmatpush1.msra.mxu0 %v3846_v48  ;;  %5010 = vst [vmem:[#allocation34_spill] sm:$0xff] %v3882_v33  ;;  %v3887_v40 = vld [vmem:[%s4716_s3 + $0x58] sm:$0xff]  ;;  %v3894_v48 = vld [vmem:[%s4716_s3 + $0x40] sm:$0xff] }
 0x226   :  { %1440 = vmatpush1.msra.mxu1 %v3851_v47  ;;  %5011 = vst [vmem:[#allocation35_spill] sm:$0xff] %v3887_v40  ;;  %1370 = vmatprep.subr.mxu0 %v3858_v32  ;;  %5012 = vst [vmem:[#allocation36_spill] sm:$0xff] %v3894_v48  ;;  %v3899_v47 = vld [vmem:[%s4716_s3 + $0x50] sm:$0xff]  ;;  %v3906_v32 = vld [vmem:[%s4716_s3 + $0x28] sm:$0xff] }
 0x227   :  { %1441 = vmatprep.subr.mxu1 %v3863_v57  ;;  %5013 = vst [vmem:[#allocation37_spill] sm:$0xff] %v3899_v47  ;;  %1371 = vmatpush1.msra.mxu0 %v3870_v31  ;;  %5014 = vst [vmem:[#allocation26_spill] sm:$0xff] %v3906_v32  ;;  %v3911_v57 = vld [vmem:[%s4716_s3 + $0x38] sm:$0xff]  ;;  %v3918_v31 = vld [vmem:[%s4716_s3 + $0x20] sm:$0xff] }
 0x228   :  { %1442 = vmatpush1.msra.mxu1 %v3875_v42  ;;  %5015 = vst [vmem:[#allocation25_spill] sm:$0xff] %v3911_v57  ;;  %1372 = vmatprep.subr.mxu0 %v3882_v33  ;;  %5016 = vst [vmem:[#allocation33_spill] sm:$0xff] %v3918_v31  ;;  %v3923_v42 = vld [vmem:[%s4716_s3 + $0x30] sm:$0xff]  ;;  %v3930_v33 = vld [vmem:[%s4716_s3 + $0x8] sm:$0xff] }
 0x229   :  { %1443 = vmatprep.subr.mxu1 %v3887_v40  ;;  %5017 = vst [vmem:[#allocation38_spill] sm:$0xff] %v3923_v42  ;;  %1373 = vmatpush1.msra.mxu0 %v3894_v48  ;;  %5018 = vst [vmem:[#allocation39_spill] sm:$0xff] %v3930_v33  ;;  %v3935_v40 = vld [vmem:[%s4716_s3 + $0x18] sm:$0xff]  ;;  %v3942_v48 = vld [vmem:[%s4716_s3] sm:$0xff] }
 0x22a   :  { %1444 = vmatpush1.msra.mxu1 %v3899_v47  ;;  %5019 = vst [vmem:[#allocation46_spill] sm:$0xff] %v3935_v40  ;;  %1374 = vmatprep.subr.mxu0 %v3906_v32  ;;  %5020 = vst [vmem:[#allocation47_spill] sm:$0xff] %v3942_v48  ;;  %v3947_v47 = vld [vmem:[%s4716_s3 + $0x10] sm:$0xff] }
 0x22b   :  { %1445 = vmatprep.subr.mxu1 %v3911_v57  ;;  %5021 = vst [vmem:[#allocation48_spill] sm:$0xff] %v3947_v47  ;;  %1375 = vmatpush1.msra.mxu0 %v3918_v31  ;;  %v113_v57 = vpop.permute.xlu1 %112 }
 0x22c   :  { %1446 = vmatpush1.msra.mxu1 %v3923_v42  ;;  %1376 = vmatprep.subr.mxu0 %v3930_v33  ;;  %v169_v32 = vmul.f32 %v4982_v1, %v113_v57  ;;  %v170_v39 = vmul.f32 %v4983_v62, %v113_v57  ;;  %v171_v31 = vmul.f32 %v4984_v56, %v113_v57 }
 0x22d   :  { %1447 = vmatprep.subr.mxu1 %v3935_v40  ;;  %1377 = vmatpush1.msra.mxu0 %v3942_v48  ;;  %v172_v42 = vmul.f32 %v3402_v0, %v113_v57 }
 0x22e   :  { %1448 = vmatpush1.msra.mxu1 %v3947_v47  ;;  %1615 = vmatprep.subr.mxu0 %v3574_v53  ;;  %v223_v33 = vadd.f32 %v4985_v43, %v169_v32  ;;  %v224_v40 = vadd.f32 %v3409_v49, %v170_v39  ;;  %v225_v48 = vadd.f32 %v4986_v2, %v171_v31 }
 0x22f   :  { %1686 = vmatprep.subr.mxu1 %v3579_v61  ;;  %v226_v47 = vadd.f32 %v3413_v50, %v172_v42 }
 0x230   :  { %v313_v53 = vcombine.low %v223_v33, %v224_v40 }
 0x231   :  { %v314_v37 = vcombine.low %v225_v48, %v226_v47 }
 0x232   :  { %v321_v1 = vrot.slane %v313_v53, %v3173_v54 }
 0x233   :  { %v328_v62 = vrot.slane %v314_v37, %v3173_v54 }
 0x235   :  { %v329_v43 = vcombine.low %v321_v1, %v328_v62 }
 0x2cd   :  { %v1143_v61 = vpop.f32.mrf.mxu0  ;;  %v1214_v36 = vpop.f32.mrf.mxu1 }
 0x2cf   :  { %v1145_v35 = vpop.f32.mrf.mxu0  ;;  %v1216_v56 = vpop.f32.mrf.mxu1 }
 0x2d0   :  { %v1223_v34 = vcombine.low %v1143_v61, %v1145_v35  ;;  %v1224_v57 = vcombine.low %v1214_v36, %v1216_v56 }
 0x2d2   :  { %v1231_v32 = vrot.slane %v1223_v34, %v3173_v54  ;;  %v1238_v39 = vrot.slane %v1224_v57, %v3173_v54 }
 0x2d4   :  { %v1239_v31 = vcombine.low %v1231_v32, %v1238_v39 }
 0x2d6   :  { %v1241_v2 = vadd.f32 %v1239_v31, %v329_v43 }
 0x2d8   :  { %2797 = vtanh.f32 %v1241_v2 }
 0x2e5   :  { %v2798_v33 = vpop.eup %2797 }
 0x2e6   :  { %v1251_v40 = vrot.slane %v2798_v33, %v3173_v54  ;;  %v1244_v48 = vcombine.high %v2798_v33, %v2798_v33 }
 0x2e8   :  { %v1259_v47 = vcombine.high %v1251_v40, %v1251_v40  ;;  %v1265_v53 = vmul.f32 %v1251_v40, %v3430_v51  ;;  %v1258_v37 = vrot.slane %v1244_v48, %v3173_v54  ;;  %v5022_v40 = vld [vmem:[#allocation11_spill] sm:$0xff]  ;;  %v5023_v48 = vld [vmem:[#allocation12_spill] sm:$0xff] }
 0x2ea   :  { %v1266_v61 = vmul.f32 %v1259_v47, %v3435_v45  ;;  %v1267_v56 = vmul.f32 %v1258_v37, %v3438_v46  ;;  %v1269_v62 = vadd.f32 %v1265_v53, %v4987_v29  ;;  %v1260_v36 = vcombine.high %v1258_v37, %v1258_v37  ;;  %v5024_v47 = vld [vmem:[#allocation13_spill] sm:$0xff]  ;;  %v5025_v53 = vld [vmem:[#allocation14_spill] sm:$0xff]  ;;  %v5026_v37 = vld [vmem:[#allocation15_spill] sm:$0xff] }
 0x2ec   :  { %v1270_v1 = vadd.f32 %v1266_v61, %v3442_v55  ;;  %v1271_v43 = vadd.f32 %v1267_v56, %v3446_v41  ;;  %v1268_v42 = vmul.f32 %v1260_v36, %v3456_v44  ;;  %v5027_v61 = vld [vmem:[#allocation16_spill] sm:$0xff]  ;;  %v5028_v56 = vld [vmem:[#allocation17_spill] sm:$0xff]  ;;  %v5034_v36 = vld [vmem:[#allocation23_spill] sm:$0xff] }
 0x2ee   :  { %v1273_v2 = vmul.f32 %v1270_v1, %v3562_v38  ;;  %v1274_v34 = vmul.f32 %v1271_v43, %v1269_v62  ;;  %v1272_v57 = vadd.f32 %v1268_v42, %v3459_v52  ;;  %v5029_v1 = vld [vmem:[#allocation18_spill] sm:$0xff]  ;;  %v5030_v62 = vld [vmem:[#allocation19_spill] sm:$0xff]  ;;  %v5031_v43 = vld [vmem:[#allocation20_spill] sm:$0xff] }
 0x2ef   :  { %v5035_v42 = vld [vmem:[#allocation24_spill] sm:$0xff] }
 0x2f0   :  { %v3978_v35 = vadd.f32 %v1274_v34, %v1273_v2  ;;  %v5032_v2 = vld [vmem:[#allocation21_spill] sm:$0xff]  ;;  %v5033_v34 = vld [vmem:[#allocation22_spill] sm:$0xff] }
 0x2f2   :  { %2799 = vtanh.f32 %v3978_v35 }
 0x2ff   :  { %v2800_v32 = vpop.eup %2799 }
 0x300   :  { %v1277_v39 = vmul.f32 %v2800_v32, %v1272_v57  ;;  %v5036_v57 = vld [vmem:[#allocation27_spill] sm:$0xff]  ;;  %v5037_v32 = vld [vmem:[#allocation28_spill] sm:$0xff] }
 0x302   :  { %1279 = vst [vmem:[#allocation3 + $0x4] sm:$0x3] %v1277_v39  ;;  %1411 = vmatmul.mubr.f32.vlgmr.msra.gmra.mxu0 %v1277_v39  ;;  %1482 = vmatmul.mubr.f32.vlgmr.msra.gmra.mxu1 %v1277_v39  ;;  %v5038_v39 = vld [vmem:[#allocation29_spill] sm:$0xff] }
 0x303   :  { %1616 = vmatpush1.msra.mxu0 %v3586_v58  ;;  %1687 = vmatpush1.msra.mxu1 %v3591_v63 }
 0x304   :  { %1617 = vmatprep.subr.mxu0 %v3598_v59  ;;  %1688 = vmatprep.subr.mxu1 %v3603_v60 }
 0x305   :  { %1618 = vmatpush1.msra.mxu0 %v3610_v3  ;;  %1689 = vmatpush1.msra.mxu1 %v3615_v4 }
 0x306   :  { %1619 = vmatprep.subr.mxu0 %v3622_v5  ;;  %1690 = vmatprep.subr.mxu1 %v3627_v6 }
 0x307   :  { %1620 = vmatpush1.msra.mxu0 %v3634_v7  ;;  %1691 = vmatpush1.msra.mxu1 %v3639_v8 }
 0x308   :  { %1621 = vmatprep.subr.mxu0 %v3646_v9  ;;  %1692 = vmatprep.subr.mxu1 %v3651_v10 }
 0x309   :  { %v2627_v38 = vld [vmem:[#allocation3 + $0x4] sm:$0x3]  ;;  %1622 = vmatpush1.msra.mxu0 %v3658_v11  ;;  %1693 = vmatpush1.msra.mxu1 %v3663_v12 }
 0x30a   :  { %v2642_v31 = vmul.f32 %v3473_v30, %v2627_v38  ;;  %1623 = vmatprep.subr.mxu0 %v3670_v13  ;;  %1694 = vmatprep.subr.mxu1 %v3675_v14  ;;  %v5039_v38 = vld [vmem:[#allocation30_spill] sm:$0xff] }
 0x30b   :  { %1624 = vmatpush1.msra.mxu0 %v3682_v15  ;;  %1695 = vmatpush1.msra.mxu1 %v3687_v16 }
 0x30c   :  { %v2655_v33 = vsel %vm2648_vm0, %v2642_v31, 0.0  ;;  %1625 = vmatprep.subr.mxu0 %v3694_v17  ;;  %1696 = vmatprep.subr.mxu1 %v3699_v18  ;;  %v5040_v31 = vld [vmem:[#allocation31_spill] sm:$0xff] }
 0x30d   :  { %2656 = vadd.xlane.f32.xlu0 %v2655_v33  ;;  %1626 = vmatpush1.msra.mxu0 %v3706_v19  ;;  %v5041_v33 = vld [vmem:[#allocation32_spill] sm:$0xff] }
 0x30e   :  { %1697 = vmatpush1.msra.mxu1 %v3711_v20  ;;  %1627 = vmatprep.subr.mxu0 %v3716_v21 }
 0x30f   :  { %1698 = vmatprep.subr.mxu1 %v3723_v22  ;;  %1628 = vmatpush1.msra.mxu0 %v3728_v23 }
 0x310   :  { %1699 = vmatpush1.msra.mxu1 %v3733_v24  ;;  %1629 = vmatprep.subr.mxu0 %v3740_v25 }
 0x311   :  { %1700 = vmatprep.subr.mxu1 %v3745_v26  ;;  %1630 = vmatpush1.msra.mxu0 %v3750_v27 }
 0x312   :  { %1701 = vmatpush1.msra.mxu1 %v3757_v28  ;;  %1631 = vmatprep.subr.mxu0 %v5022_v40 }
 0x313   :  { %1702 = vmatprep.subr.mxu1 %v5023_v48  ;;  %1632 = vmatpush1.msra.mxu0 %v5024_v47 }
 0x314   :  { %1703 = vmatpush1.msra.mxu1 %v5025_v53  ;;  %1633 = vmatprep.subr.mxu0 %v5026_v37 }
 0x315   :  { %1704 = vmatprep.subr.mxu1 %v5027_v61  ;;  %1634 = vmatpush1.msra.mxu0 %v5028_v56 }
 0x316   :  { %1705 = vmatpush1.msra.mxu1 %v5029_v1  ;;  %1635 = vmatprep.subr.mxu0 %v5030_v62 }
 0x317   :  { %1706 = vmatprep.subr.mxu1 %v5031_v43  ;;  %1636 = vmatpush1.msra.mxu0 %v5032_v2  ;;  %v5042_v43 = vld [vmem:[#allocation34_spill] sm:$0xff]  ;;  %v5043_v2 = vld [vmem:[#allocation35_spill] sm:$0xff] }
 0x318   :  { %1707 = vmatpush1.msra.mxu1 %v5033_v34  ;;  %1637 = vmatprep.subr.mxu0 %v5034_v36  ;;  %v5044_v34 = vld [vmem:[#allocation36_spill] sm:$0xff]  ;;  %v5045_v36 = vld [vmem:[#allocation37_spill] sm:$0xff] }
 0x319   :  { %1708 = vmatprep.subr.mxu1 %v5035_v42  ;;  %1638 = vmatpush1.msra.mxu0 %v5036_v57  ;;  %v5046_v42 = vld [vmem:[#allocation26_spill] sm:$0xff]  ;;  %v5047_v57 = vld [vmem:[#allocation25_spill] sm:$0xff] }
 0x31a   :  { %1709 = vmatpush1.msra.mxu1 %v5037_v32  ;;  %1639 = vmatprep.subr.mxu0 %v5038_v39  ;;  %v5048_v32 = vld [vmem:[#allocation33_spill] sm:$0xff]  ;;  %v5049_v39 = vld [vmem:[#allocation38_spill] sm:$0xff] }
 0x31b   :  { %1710 = vmatprep.subr.mxu1 %v5039_v38  ;;  %1640 = vmatpush1.msra.mxu0 %v5040_v31  ;;  %v5050_v38 = vld [vmem:[#allocation39_spill] sm:$0xff]  ;;  %v5051_v31 = vld [vmem:[#allocation46_spill] sm:$0xff] }
 0x31c   :  { %1711 = vmatpush1.msra.mxu1 %v5041_v33  ;;  %1641 = vmatprep.subr.mxu0 %v5042_v43  ;;  %v5052_v33 = vld [vmem:[#allocation47_spill] sm:$0xff]  ;;  %v5053_v43 = vmov 0.0  }
 0x31d   :  { %1712 = vmatprep.subr.mxu1 %v5043_v2  ;;  %1642 = vmatpush1.msra.mxu0 %v5044_v34  ;;  %v5054_v2 = vld [vmem:[#allocation48_spill] sm:$0xff] }
 0x31e   :  { %1713 = vmatpush1.msra.mxu1 %v5045_v36  ;;  %1643 = vmatprep.subr.mxu0 %v5046_v42  ;;  %v5055_v36 = vld [vmem:[#allocation9_spill] sm:$0xff]  ;;  %v5056_v42 = vld [vmem:[#allocation10_spill] sm:$0xff] }
 0x31f   :  { %1714 = vmatprep.subr.mxu1 %v5047_v57  ;;  %1644 = vmatpush1.msra.mxu0 %v5048_v32  ;;  %v118_v57 = vpop.permute.xlu1 %117  ;;  %v5057_v32 = vld [vmem:[#allocation40_spill] sm:$0xff] }
 0x320   :  { %1715 = vmatpush1.msra.mxu1 %v5049_v39  ;;  %1645 = vmatprep.subr.mxu0 %v5050_v38  ;;  %v173_v34 = vmul.f32 %v5057_v32, %v118_v57  ;;  %v5058_v39 = vld [vmem:[#allocation41_spill] sm:$0xff]  ;;  %v5059_v38 = vld [vmem:[#allocation42_spill] sm:$0xff] }
 0x321   :  { %1716 = vmatprep.subr.mxu1 %v5051_v31  ;;  %1646 = vmatpush1.msra.mxu0 %v5052_v33  ;;  %v174_v62 = vmul.f32 %v5058_v39, %v118_v57  ;;  %v175_v1 = vmul.f32 %v5059_v38, %v118_v57  ;;  %v176_v31 = vmul.f32 %v3402_v0, %v118_v57  ;;  %v5060_v33 = vld [vmem:[#allocation43_spill] sm:$0xff] }
 0x322   :  { %1679 = vmatprep.mubr.f32.mxu0 %v5053_v43  ;;  %1717 = vmatpush1.msra.mxu1 %v5054_v2  ;;  %v227_v56 = vadd.f32 %v5060_v33, %v173_v34  ;;  %v5061_v2 = vld [vmem:[#allocation45_spill] sm:$0xff] }
 0x323   :  { %1750 = vmatprep.mubr.f32.mxu1 %v5053_v43  ;;  %1884 = vmatprep.subr.mxu0 %v5055_v36  ;;  %v228_v61 = vadd.f32 %v3409_v49, %v174_v62  ;;  %v229_v37 = vadd.f32 %v5061_v2, %v175_v1  ;;  %v230_v43 = vadd.f32 %v3413_v50, %v176_v31 }
 0x324   :  { %1955 = vmatprep.subr.mxu1 %v5056_v42 }
 0x325   :  { %v330_v36 = vcombine.low %v227_v56, %v228_v61  ;;  %v331_v53 = vcombine.low %v229_v37, %v230_v43 }
 0x327   :  { %v338_v39 = vrot.slane %v330_v36, %v3173_v54  ;;  %v345_v38 = vrot.slane %v331_v53, %v3173_v54 }
 0x329   :  { %v346_v49 = vcombine.low %v338_v39, %v345_v38 }
 0x3c2   :  { %v1412_v42 = vpop.f32.mrf.mxu0  ;;  %v1483_v47 = vpop.f32.mrf.mxu1 }
 0x3c4   :  { %v1414_v48 = vpop.f32.mrf.mxu0  ;;  %v1485_v32 = vpop.f32.mrf.mxu1 }
 0x3c5   :  { %v1492_v40 = vcombine.low %v1412_v42, %v1414_v48  ;;  %v1493_v57 = vcombine.low %v1483_v47, %v1485_v32 }
 0x3c7   :  { %v1500_v34 = vrot.slane %v1492_v40, %v3173_v54  ;;  %v1507_v62 = vrot.slane %v1493_v57, %v3173_v54 }
 0x3c9   :  { %v1508_v1 = vcombine.low %v1500_v34, %v1507_v62 }
 0x3cb   :  { %v1510_v2 = vadd.f32 %v1508_v1, %v346_v49  ;;  %v5091_v1 = vld [vmem:[#allocation46_spill] sm:$0xff] }
 0x3cd   :  { %2801 = vtanh.f32 %v1510_v2 }
 0x3da   :  { %v2802_v61 = vpop.eup %2801 }
 0x3db   :  { %v1520_v37 = vrot.slane %v2802_v61, %v3173_v54  ;;  %v1513_v56 = vcombine.high %v2802_v61, %v2802_v61  ;;  %v5092_v61 = vld [vmem:[#allocation47_spill] sm:$0xff] }
 0x3dd   :  { %v1528_v43 = vcombine.high %v1520_v37, %v1520_v37  ;;  %v1534_v48 = vmul.f32 %v1520_v37, %v3430_v51  ;;  %v1527_v31 = vrot.slane %v1513_v56, %v3173_v54  ;;  %v5093_v37 = vmov 0.0   ;;  %v5094_v56 = vld [vmem:[#allocation48_spill] sm:$0xff] }
 0x3df   :  { %v1535_v53 = vmul.f32 %v1528_v43, %v3435_v45  ;;  %v1536_v47 = vmul.f32 %v1527_v31, %v3438_v46  ;;  %v1538_v32 = vadd.f32 %v1534_v48, %v4987_v29  ;;  %v1529_v36 = vcombine.high %v1527_v31, %v1527_v31  ;;  %v123_v43 = vpop.permute.xlu0 %122  ;;  %v5095_v48 = vld [vmem:[#allocation40_spill] sm:$0xff] }
 0x3e0   :  { %v177_v31 = vmul.f32 %v5095_v48, %v123_v43 }
 0x3e1   :  { %v1539_v40 = vadd.f32 %v1535_v53, %v3442_v55  ;;  %v1540_v49 = vadd.f32 %v1536_v47, %v3446_v41  ;;  %v1537_v42 = vmul.f32 %v1529_v36, %v3456_v44  ;;  %v5096_v53 = vld [vmem:[#allocation41_spill] sm:$0xff] }
 0x3e2   :  { %v178_v47 = vmul.f32 %v5096_v53, %v123_v43 }
 0x3e3   :  { %v1542_v2 = vmul.f32 %v1539_v40, %v3978_v35  ;;  %v1543_v39 = vmul.f32 %v1540_v49, %v1538_v32  ;;  %v1541_v57 = vadd.f32 %v1537_v42, %v3459_v52  ;;  %v5090_v35 = vld [vmem:[#allocation39_spill] sm:$0xff]  ;;  %v5097_v40 = vld [vmem:[#allocation42_spill] sm:$0xff]  ;;  %v180_v49 = vmul.f32 %v3402_v0, %v123_v43  ;;  %v5099_v42 = vld [vmem:[#allocation45_spill] sm:$0xff] }
 0x3e4   :  { %v179_v32 = vmul.f32 %v5097_v40, %v123_v43 }
 0x3e5   :  { %v4072_v38 = vadd.f32 %v1543_v39, %v1542_v2  ;;  %v231_v2 = vadd.f32 %v5060_v33, %v177_v31  ;;  %v5098_v39 = vld [vmem:[#allocation44_spill] sm:$0xff]  ;;  %v4181_v31 = vld [vmem:[%s4716_s3 + $0x1e8] sm:$0xff] }
 0x3e6   :  { %v232_v36 = vadd.f32 %v5098_v39, %v178_v47  ;;  %v4186_v47 = vld [vmem:[%s4716_s3 + $0x1f8] sm:$0xff] }
 0x3e7   :  { %2803 = vtanh.f32 %v4072_v38 }
 0x3f4   :  { %v2804_v34 = vpop.eup %2803 }
 0x3f5   :  { %v1546_v62 = vmul.f32 %v2804_v34, %v1541_v57  ;;  %v233_v57 = vadd.f32 %v5099_v42, %v179_v32  ;;  %v234_v34 = vadd.f32 %v3413_v50, %v180_v49  ;;  %v4193_v32 = vld [vmem:[%s4716_s3 + $0x1e0] sm:$0xff]  ;;  %v4198_v49 = vld [vmem:[%s4716_s3 + $0x1f0] sm:$0xff] }
 0x3f7   :  { %1548 = vst [vmem:[#allocation3 + $0x6] sm:$0x3] %v1546_v62  ;;  %1680 = vmatmul.mubr.f32.vlgmr.msra.gmra.mxu0 %v1546_v62  ;;  %1751 = vmatmul.mubr.f32.vlgmr.msra.gmra.mxu1 %v1546_v62  ;;  %v347_v62 = vcombine.low %v231_v2, %v232_v36  ;;  %v4205_v2 = vld [vmem:[%s4716_s3 + $0x1c8] sm:$0xff]  ;;  %v4210_v36 = vld [vmem:[%s4716_s3 + $0x1d8] sm:$0xff] }
 0x3f8   :  { %1885 = vmatpush1.msra.mxu0 %v3586_v58  ;;  %1956 = vmatpush1.msra.mxu1 %v3591_v63 }
 0x3f9   :  { %1886 = vmatprep.subr.mxu0 %v3598_v59  ;;  %1957 = vmatprep.subr.mxu1 %v3603_v60  ;;  %v5063_v60 = vld [vmem:[#allocation12_spill] sm:$0xff] }
 0x3fa   :  { %1887 = vmatpush1.msra.mxu0 %v3610_v3  ;;  %1958 = vmatpush1.msra.mxu1 %v3615_v4  ;;  %v5064_v3 = vld [vmem:[#allocation13_spill] sm:$0xff]  ;;  %v5065_v4 = vld [vmem:[#allocation14_spill] sm:$0xff] }
 0x3fb   :  { %1888 = vmatprep.subr.mxu0 %v3622_v5  ;;  %1959 = vmatprep.subr.mxu1 %v3627_v6  ;;  %v5066_v5 = vld [vmem:[#allocation15_spill] sm:$0xff]  ;;  %v5067_v6 = vld [vmem:[#allocation16_spill] sm:$0xff] }
 0x3fc   :  { %1889 = vmatpush1.msra.mxu0 %v3634_v7  ;;  %1960 = vmatpush1.msra.mxu1 %v3639_v8  ;;  %v5068_v7 = vld [vmem:[#allocation17_spill] sm:$0xff]  ;;  %v5069_v8 = vld [vmem:[#allocation18_spill] sm:$0xff] }
 0x3fd   :  { %1890 = vmatprep.subr.mxu0 %v3646_v9  ;;  %1961 = vmatprep.subr.mxu1 %v3651_v10  ;;  %v5070_v9 = vld [vmem:[#allocation19_spill] sm:$0xff]  ;;  %v5071_v10 = vld [vmem:[#allocation20_spill] sm:$0xff] }
 0x3fe   :  { %v2628_v58 = vld [vmem:[#allocation3 + $0x6] sm:$0x3]  ;;  %1891 = vmatpush1.msra.mxu0 %v3658_v11  ;;  %1962 = vmatpush1.msra.mxu1 %v3663_v12  ;;  %v5072_v11 = vld [vmem:[#allocation21_spill] sm:$0xff] }
 0x3ff   :  { %v2643_v63 = vmul.f32 %v3473_v30, %v2628_v58  ;;  %1892 = vmatprep.subr.mxu0 %v3670_v13  ;;  %1963 = vmatprep.subr.mxu1 %v3675_v14  ;;  %v5062_v30 = vld [vmem:[#allocation11_spill] sm:$0xff]  ;;  %v5073_v12 = vld [vmem:[#allocation22_spill] sm:$0xff]  ;;  %v5075_v14 = vld [vmem:[#allocation24_spill] sm:$0xff]  ;;  %v348_v58 = vcombine.low %v233_v57, %v234_v34 }
 0x400   :  { %1893 = vmatpush1.msra.mxu0 %v3682_v15  ;;  %1964 = vmatpush1.msra.mxu1 %v3687_v16  ;;  %v5074_v13 = vld [vmem:[#allocation23_spill] sm:$0xff]  ;;  %v5077_v16 = vld [vmem:[#allocation28_spill] sm:$0xff]  ;;  %v4217_v57 = vld [vmem:[%s4716_s3 + $0x1c0] sm:$0xff] }
 0x401   :  { %v2658_v59 = vsel %vm2648_vm0, %v2643_v63, 0.0  ;;  %1894 = vmatprep.subr.mxu0 %v3694_v17  ;;  %1965 = vmatprep.subr.mxu1 %v3699_v18  ;;  %v5076_v15 = vld [vmem:[#allocation27_spill] sm:$0xff]  ;;  %v5078_v17 = vld [vmem:[#allocation29_spill] sm:$0xff]  ;;  %v5079_v18 = vld [vmem:[#allocation30_spill] sm:$0xff] }
 0x402   :  { %2659 = vadd.xlane.f32.xlu0 %v2658_v59  ;;  %1895 = vmatpush1.msra.mxu0 %v3706_v19  ;;  %v5080_v19 = vld [vmem:[#allocation31_spill] sm:$0xff] }
 0x403   :  { %1966 = vmatpush1.msra.mxu1 %v3711_v20  ;;  %1896 = vmatprep.subr.mxu0 %v3716_v21  ;;  %v5081_v20 = vld [vmem:[#allocation32_spill] sm:$0xff]  ;;  %v5082_v21 = vld [vmem:[#allocation34_spill] sm:$0xff] }
 0x404   :  { %1967 = vmatprep.subr.mxu1 %v3723_v22  ;;  %1897 = vmatpush1.msra.mxu0 %v3728_v23  ;;  %v5083_v22 = vld [vmem:[#allocation35_spill] sm:$0xff]  ;;  %v5084_v23 = vld [vmem:[#allocation36_spill] sm:$0xff] }
 0x405   :  { %1968 = vmatpush1.msra.mxu1 %v3733_v24  ;;  %1898 = vmatprep.subr.mxu0 %v3740_v25  ;;  %v5085_v24 = vld [vmem:[#allocation37_spill] sm:$0xff]  ;;  %v5086_v25 = vld [vmem:[#allocation26_spill] sm:$0xff]  ;;  %v4222_v34 = vld [vmem:[%s4716_s3 + $0x1d0] sm:$0xff] }
 0x406   :  { %1969 = vmatprep.subr.mxu1 %v3745_v26  ;;  %1899 = vmatpush1.msra.mxu0 %v3750_v27  ;;  %v5087_v26 = vld [vmem:[#allocation25_spill] sm:$0xff] }
 0x407   :  { %1970 = vmatpush1.msra.mxu1 %v3757_v28  ;;  %1900 = vmatprep.subr.mxu0 %v5062_v30  ;;  %v5088_v27 = vld [vmem:[#allocation33_spill] sm:$0xff]  ;;  %v5089_v28 = vld [vmem:[#allocation38_spill] sm:$0xff] }
 0x408   :  { %1971 = vmatprep.subr.mxu1 %v5063_v60  ;;  %1901 = vmatpush1.msra.mxu0 %v5064_v3 }
 0x409   :  { %1972 = vmatpush1.msra.mxu1 %v5065_v4  ;;  %1902 = vmatprep.subr.mxu0 %v5066_v5  ;;  %v355_v4 = vrot.slane %v347_v62, %v3173_v54  ;;  %v362_v5 = vrot.slane %v348_v58, %v3173_v54  ;;  %v4229_v62 = vld [vmem:[%s4716_s3 + $0x1a8] sm:$0xff]  ;;  %v4234_v58 = vld [vmem:[%s4716_s3 + $0x1b8] sm:$0xff] }
 0x40a   :  { %1973 = vmatprep.subr.mxu1 %v5067_v6  ;;  %1903 = vmatpush1.msra.mxu0 %v5068_v7 }
 0x40b   :  { %1974 = vmatpush1.msra.mxu1 %v5069_v8  ;;  %1904 = vmatprep.subr.mxu0 %v5070_v9  ;;  %v363_v9 = vcombine.low %v355_v4, %v362_v5  ;;  %v4270_v4 = vld [vmem:[%s4716_s3 + $0x190] sm:$0xff]  ;;  %v4277_v5 = vld [vmem:[%s4716_s3 + $0x168] sm:$0xff] }
 0x40c   :  { %1975 = vmatprep.subr.mxu1 %v5071_v10  ;;  %1905 = vmatpush1.msra.mxu0 %v5072_v11 }
 0x40d   :  { %1976 = vmatpush1.msra.mxu1 %v5073_v12  ;;  %1906 = vmatprep.subr.mxu0 %v5074_v13 }
 0x40e   :  { %1977 = vmatprep.subr.mxu1 %v5075_v14  ;;  %1907 = vmatpush1.msra.mxu0 %v5076_v15 }
 0x40f   :  { %1978 = vmatpush1.msra.mxu1 %v5077_v16  ;;  %1908 = vmatprep.subr.mxu0 %v5078_v17 }
 0x410   :  { %1979 = vmatprep.subr.mxu1 %v5079_v18  ;;  %1909 = vmatpush1.msra.mxu0 %v5080_v19 }
 0x411   :  { %1980 = vmatpush1.msra.mxu1 %v5081_v20  ;;  %1910 = vmatprep.subr.mxu0 %v5082_v21 }
 0x412   :  { %1981 = vmatprep.subr.mxu1 %v5083_v22  ;;  %1911 = vmatpush1.msra.mxu0 %v5084_v23 }
 0x413   :  { %1982 = vmatpush1.msra.mxu1 %v5085_v24  ;;  %1912 = vmatprep.subr.mxu0 %v5086_v25 }
 0x414   :  { %1983 = vmatprep.subr.mxu1 %v5087_v26  ;;  %1913 = vmatpush1.msra.mxu0 %v5088_v27 }
 0x415   :  { %1984 = vmatpush1.msra.mxu1 %v5089_v28  ;;  %1914 = vmatprep.subr.mxu0 %v5090_v35 }
 0x416   :  { %1985 = vmatprep.subr.mxu1 %v5091_v1  ;;  %1915 = vmatpush1.msra.mxu0 %v5092_v61  ;;  %v4174_v61 = vld [vmem:[%s4719_s6] ss:$0 sm:$0xff] }
 0x417   :  { %1948 = vmatprep.mubr.f32.mxu0 %v5093_v37  ;;  %1986 = vmatpush1.msra.mxu1 %v5094_v56 }
 0x418   :  { %2019 = vmatprep.mubr.f32.mxu1 %v5093_v37  ;;  %2153 = vmatprep.subr.mxu0 %v4181_v31 }
 0x419   :  { %2224 = vmatprep.subr.mxu1 %v4186_v47 }
 0x4b7   :  { %v1681_v63 = vpop.f32.mrf.mxu0  ;;  %v1752_v59 = vpop.f32.mrf.mxu1 }
 0x4b9   :  { %v1683_v30 = vpop.f32.mrf.mxu0  ;;  %v1754_v60 = vpop.f32.mrf.mxu1 }
 0x4ba   :  { %v1761_v3 = vcombine.low %v1681_v63, %v1683_v30  ;;  %v1762_v6 = vcombine.low %v1752_v59, %v1754_v60  ;;  %v4241_v63 = vld [vmem:[%s4716_s3 + $0x1a0] sm:$0xff]  ;;  %v4246_v59 = vld [vmem:[%s4716_s3 + $0x1b0] sm:$0xff]  ;;  %v4253_v30 = vld [vmem:[%s4716_s3 + $0x188] sm:$0xff] }
 0x4bb   :  { %v4258_v60 = vld [vmem:[%s4716_s3 + $0x198] sm:$0xff] }
 0x4bc   :  { %v1769_v7 = vrot.slane %v1761_v3, %v3173_v54  ;;  %v1776_v8 = vrot.slane %v1762_v6, %v3173_v54  ;;  %v4265_v3 = vld [vmem:[%s4716_s3 + $0x180] sm:$0xff]  ;;  %v4282_v6 = vld [vmem:[%s4716_s3 + $0x178] sm:$0xff] }
 0x4be   :  { %v1777_v10 = vcombine.low %v1769_v7, %v1776_v8  ;;  %v4289_v7 = vld [vmem:[%s4716_s3 + $0x160] sm:$0xff]  ;;  %v4294_v8 = vld [vmem:[%s4716_s3 + $0x170] sm:$0xff] }
 0x4c0   :  { %v1779_v11 = vadd.f32 %v1777_v10, %v363_v9  ;;  %v4301_v9 = vld [vmem:[%s4716_s3 + $0x148] sm:$0xff]  ;;  %v4306_v10 = vld [vmem:[%s4716_s3 + $0x158] sm:$0xff] }
 0x4c2   :  { %2805 = vtanh.f32 %v1779_v11  ;;  %v4313_v11 = vld [vmem:[%s4716_s3 + $0x140] sm:$0xff] }
 0x4cf   :  { %v2806_v12 = vpop.eup %2805 }
 0x4d0   :  { %v1789_v13 = vrot.slane %v2806_v12, %v3173_v54  ;;  %v1782_v14 = vcombine.high %v2806_v12, %v2806_v12  ;;  %v4318_v12 = vld [vmem:[%s4716_s3 + $0x150] sm:$0xff] }
 0x4d2   :  { %v1797_v15 = vcombine.high %v1789_v13, %v1789_v13  ;;  %v1803_v16 = vmul.f32 %v1789_v13, %v3430_v51  ;;  %v1796_v17 = vrot.slane %v1782_v14, %v3173_v54  ;;  %v4323_v13 = vld [vmem:[%s4716_s3 + $0x128] sm:$0xff]  ;;  %v4330_v14 = vld [vmem:[%s4716_s3 + $0x138] sm:$0xff] }
 0x4d4   :  { %v1804_v18 = vmul.f32 %v1797_v15, %v3435_v45  ;;  %v1805_v19 = vmul.f32 %v1796_v17, %v3438_v46  ;;  %v1807_v21 = vadd.f32 %v1803_v16, %v4987_v29  ;;  %v1798_v26 = vcombine.high %v1796_v17, %v1796_v17  ;;  %v4335_v15 = vld [vmem:[%s4716_s3 + $0x120] sm:$0xff]  ;;  %v4340_v16 = vld [vmem:[%s4716_s3 + $0x130] sm:$0xff]  ;;  %v4347_v17 = vld [vmem:[%s4716_s3 + $0x108] sm:$0xff] }
 0x4d6   :  { %v1808_v20 = vadd.f32 %v1804_v18, %v3442_v55  ;;  %v1809_v22 = vadd.f32 %v1805_v19, %v3446_v41  ;;  %v1806_v27 = vmul.f32 %v1798_v26, %v3456_v44  ;;  %v4352_v18 = vld [vmem:[%s4716_s3 + $0x118] sm:$0xff]  ;;  %v4357_v19 = vld [vmem:[%s4716_s3 + $0x100] sm:$0xff]  ;;  %v4393_v26 = vld [vmem:[%s4716_s3 + $0xc8] sm:$0xff] }
 0x4d7   :  { %5104 = vst [vmem:[#allocation12_spill] sm:$0xff] %v4393_v26 }
 0x4d8   :  { %v1811_v23 = vmul.f32 %v1808_v20, %v4072_v38  ;;  %v1812_v24 = vmul.f32 %v1809_v22, %v1807_v21  ;;  %v1810_v28 = vadd.f32 %v1806_v27, %v3459_v52  ;;  %v4364_v20 = vld [vmem:[%s4716_s3 + $0x110] sm:$0xff]  ;;  %v4369_v21 = vld [vmem:[%s4716_s3 + $0xe8] sm:$0xff]  ;;  %v4374_v22 = vld [vmem:[%s4716_s3 + $0xf8] sm:$0xff] }
 0x4d9   :  { %5100 = vst [vmem:[#allocation9_spill] sm:$0xff] %v4369_v21  ;;  %5101 = vst [vmem:[#allocation10_spill] sm:$0xff] %v4374_v22  ;;  %v4398_v27 = vld [vmem:[%s4716_s3 + $0xd8] sm:$0xff] }
 0x4da   :  { %v4164_v25 = vadd.f32 %v1812_v24, %v1811_v23  ;;  %v4381_v23 = vld [vmem:[%s4716_s3 + $0xe0] sm:$0xff]  ;;  %v4386_v24 = vld [vmem:[%s4716_s3 + $0xf0] sm:$0xff]  ;;  %5105 = vst [vmem:[#allocation13_spill] sm:$0xff] %v4398_v27 }
 0x4db   :  { %5102 = vst [vmem:[#allocation43_spill] sm:$0xff] %v4381_v23  ;;  %5103 = vst [vmem:[#allocation11_spill] sm:$0xff] %v4386_v24 }
 0x4dc   :  { %2807 = vtanh.f32 %v4164_v25 }
 0x4e9   :  { %v2808_v35 = vpop.eup %2807 }
 0x4ea   :  { %v1815_v1 = vmul.f32 %v2808_v35, %v1810_v28  ;;  %v4405_v28 = vld [vmem:[%s4716_s3 + $0xc0] sm:$0xff]  ;;  %v4410_v35 = vld [vmem:[%s4716_s3 + $0xd0] sm:$0xff] }
 0x4eb   :  { %5106 = vst [vmem:[#allocation14_spill] sm:$0xff] %v4405_v28  ;;  %5107 = vst [vmem:[#allocation15_spill] sm:$0xff] %v4410_v35 }
 0x4ec   :  { %1817 = vst [vmem:[#allocation3 + $0x8] sm:$0x3] %v1815_v1  ;;  %1949 = vmatmul.mubr.f32.vlgmr.msra.gmra.mxu0 %v1815_v1  ;;  %2020 = vmatmul.mubr.f32.vlgmr.msra.gmra.mxu1 %v1815_v1  ;;  %v4417_v1 = vld [vmem:[%s4716_s3 + $0xa8] sm:$0xff] }
 0x4ed   :  { %2217 = vmatprep.mubr.f32.mxu0 %v5093_v37  ;;  %2288 = vmatprep.mubr.f32.mxu1 %v5093_v37  ;;  %5108 = vst [vmem:[#allocation16_spill] sm:$0xff] %v4417_v1  ;;  %v4441_v37 = vld [vmem:[%s4716_s3 + $0x88] sm:$0xff] }
 0x4ee   :  { %2154 = vmatpush1.msra.mxu0 %v4193_v32  ;;  %2225 = vmatpush1.msra.mxu1 %v4198_v49  ;;  %5112 = vst [vmem:[#allocation20_spill] sm:$0xff] %v4441_v37 }
 0x4ef   :  { %2155 = vmatprep.subr.mxu0 %v4205_v2  ;;  %2226 = vmatprep.subr.mxu1 %v4210_v36 }
 0x4f0   :  { %2156 = vmatpush1.msra.mxu0 %v4217_v57  ;;  %2227 = vmatpush1.msra.mxu1 %v4222_v34 }
 0x4f1   :  { %2157 = vmatprep.subr.mxu0 %v4229_v62  ;;  %2228 = vmatprep.subr.mxu1 %v4234_v58 }
 0x4f2   :  { %2158 = vmatpush1.msra.mxu0 %v4241_v63  ;;  %2229 = vmatpush1.msra.mxu1 %v4246_v59 }
 0x4f3   :  { %v2629_v38 = vld [vmem:[#allocation3 + $0x8] sm:$0x3]  ;;  %2159 = vmatprep.subr.mxu0 %v4253_v30  ;;  %2230 = vmatprep.subr.mxu1 %v4258_v60 }
 0x4f4   :  { %v2644_v56 = vmul.f32 %v4174_v61, %v2629_v38  ;;  %2160 = vmatpush1.msra.mxu0 %v4265_v3  ;;  %2231 = vmatpush1.msra.mxu1 %v4270_v4  ;;  %v4422_v38 = vld [vmem:[%s4716_s3 + $0xb8] sm:$0xff] }
 0x4f5   :  { %2161 = vmatprep.subr.mxu0 %v4277_v5  ;;  %2232 = vmatprep.subr.mxu1 %v4282_v6  ;;  %5109 = vst [vmem:[#allocation17_spill] sm:$0xff] %v4422_v38 }
 0x4f6   :  { %v2661_v43 = vsel %vm2648_vm0, %v2644_v56, 0.0  ;;  %2162 = vmatpush1.msra.mxu0 %v4289_v7  ;;  %2233 = vmatpush1.msra.mxu1 %v4294_v8  ;;  %v4429_v56 = vld [vmem:[%s4716_s3 + $0xa0] sm:$0xff] }
 0x4f7   :  { %2662 = vadd.xlane.f32.xlu1 %v2661_v43  ;;  %2163 = vmatprep.subr.mxu0 %v4301_v9  ;;  %5110 = vst [vmem:[#allocation18_spill] sm:$0xff] %v4429_v56  ;;  %v4434_v43 = vld [vmem:[%s4716_s3 + $0xb0] sm:$0xff] }
 0x4f8   :  { %2234 = vmatprep.subr.mxu1 %v4306_v10  ;;  %2164 = vmatpush1.msra.mxu0 %v4313_v11  ;;  %5111 = vst [vmem:[#allocation19_spill] sm:$0xff] %v4434_v43 }
 0x4f9   :  { %2235 = vmatpush1.msra.mxu1 %v4318_v12  ;;  %2165 = vmatprep.subr.mxu0 %v4323_v13 }
 0x4fa   :  { %2236 = vmatprep.subr.mxu1 %v4330_v14  ;;  %2166 = vmatpush1.msra.mxu0 %v4335_v15 }
 0x4fb   :  { %2237 = vmatpush1.msra.mxu1 %v4340_v16  ;;  %2167 = vmatprep.subr.mxu0 %v4347_v17 }
 0x4fc   :  { %2238 = vmatprep.subr.mxu1 %v4352_v18  ;;  %2168 = vmatpush1.msra.mxu0 %v4357_v19 }
 0x4fd   :  { %2239 = vmatpush1.msra.mxu1 %v4364_v20  ;;  %2169 = vmatprep.subr.mxu0 %v4369_v21 }
 0x4fe   :  { %2240 = vmatprep.subr.mxu1 %v4374_v22  ;;  %2170 = vmatpush1.msra.mxu0 %v4381_v23 }
 0x4ff   :  { %2241 = vmatpush1.msra.mxu1 %v4386_v24  ;;  %2171 = vmatprep.subr.mxu0 %v4393_v26 }
 0x500   :  { %2242 = vmatprep.subr.mxu1 %v4398_v27  ;;  %2172 = vmatpush1.msra.mxu0 %v4405_v28  ;;  %v4446_v27 = vld [vmem:[%s4716_s3 + $0x98] sm:$0xff]  ;;  %v4453_v28 = vld [vmem:[%s4716_s3 + $0x80] sm:$0xff] }
 0x501   :  { %2243 = vmatpush1.msra.mxu1 %v4410_v35  ;;  %5113 = vst [vmem:[#allocation21_spill] sm:$0xff] %v4446_v27  ;;  %2173 = vmatprep.subr.mxu0 %v4417_v1  ;;  %5114 = vst [vmem:[#allocation22_spill] sm:$0xff] %v4453_v28  ;;  %v4458_v35 = vld [vmem:[%s4716_s3 + $0x90] sm:$0xff]  ;;  %v4465_v1 = vld [vmem:[%s4716_s3 + $0x68] sm:$0xff] }
 0x502   :  { %2244 = vmatprep.subr.mxu1 %v4422_v38  ;;  %5115 = vst [vmem:[#allocation23_spill] sm:$0xff] %v4458_v35  ;;  %2174 = vmatpush1.msra.mxu0 %v4429_v56  ;;  %5116 = vst [vmem:[#allocation24_spill] sm:$0xff] %v4465_v1  ;;  %v4470_v38 = vld [vmem:[%s4716_s3 + $0x78] sm:$0xff]  ;;  %v4477_v56 = vld [vmem:[%s4716_s3 + $0x60] sm:$0xff] }
 0x503   :  { %2245 = vmatpush1.msra.mxu1 %v4434_v43  ;;  %5117 = vst [vmem:[#allocation27_spill] sm:$0xff] %v4470_v38  ;;  %2175 = vmatprep.subr.mxu0 %v4441_v37  ;;  %5118 = vst [vmem:[#allocation28_spill] sm:$0xff] %v4477_v56  ;;  %v4482_v43 = vld [vmem:[%s4716_s3 + $0x70] sm:$0xff]  ;;  %v4489_v37 = vld [vmem:[%s4716_s3 + $0x48] sm:$0xff] }
 0x504   :  { %2246 = vmatprep.subr.mxu1 %v4446_v27  ;;  %5119 = vst [vmem:[#allocation29_spill] sm:$0xff] %v4482_v43  ;;  %2176 = vmatpush1.msra.mxu0 %v4453_v28  ;;  %5120 = vst [vmem:[#allocation30_spill] sm:$0xff] %v4489_v37  ;;  %v4494_v27 = vld [vmem:[%s4716_s3 + $0x58] sm:$0xff]  ;;  %v4501_v28 = vld [vmem:[%s4716_s3 + $0x40] sm:$0xff] }
 0x505   :  { %2247 = vmatpush1.msra.mxu1 %v4458_v35  ;;  %5121 = vst [vmem:[#allocation31_spill] sm:$0xff] %v4494_v27  ;;  %2177 = vmatprep.subr.mxu0 %v4465_v1  ;;  %5122 = vst [vmem:[#allocation32_spill] sm:$0xff] %v4501_v28  ;;  %v4506_v35 = vld [vmem:[%s4716_s3 + $0x50] sm:$0xff]  ;;  %v4513_v1 = vld [vmem:[%s4716_s3 + $0x28] sm:$0xff] }
 0x506   :  { %2248 = vmatprep.subr.mxu1 %v4470_v38  ;;  %5123 = vst [vmem:[#allocation34_spill] sm:$0xff] %v4506_v35  ;;  %2178 = vmatpush1.msra.mxu0 %v4477_v56  ;;  %5124 = vst [vmem:[#allocation35_spill] sm:$0xff] %v4513_v1  ;;  %v4518_v38 = vld [vmem:[%s4716_s3 + $0x38] sm:$0xff]  ;;  %v4525_v56 = vld [vmem:[%s4716_s3 + $0x20] sm:$0xff] }
 0x507   :  { %2249 = vmatpush1.msra.mxu1 %v4482_v43  ;;  %5125 = vst [vmem:[#allocation36_spill] sm:$0xff] %v4518_v38  ;;  %2179 = vmatprep.subr.mxu0 %v4489_v37  ;;  %5126 = vst [vmem:[#allocation37_spill] sm:$0xff] %v4525_v56  ;;  %v4530_v43 = vld [vmem:[%s4716_s3 + $0x30] sm:$0xff]  ;;  %v4537_v37 = vld [vmem:[%s4716_s3 + $0x8] sm:$0xff] }
 0x508   :  { %2250 = vmatprep.subr.mxu1 %v4494_v27  ;;  %5127 = vst [vmem:[#allocation26_spill] sm:$0xff] %v4530_v43  ;;  %2180 = vmatpush1.msra.mxu0 %v4501_v28  ;;  %5128 = vst [vmem:[#allocation25_spill] sm:$0xff] %v4537_v37  ;;  %v4542_v27 = vld [vmem:[%s4716_s3 + $0x18] sm:$0xff]  ;;  %v4549_v28 = vld [vmem:[%s4716_s3] sm:$0xff] }
 0x509   :  { %2251 = vmatpush1.msra.mxu1 %v4506_v35  ;;  %5129 = vst [vmem:[#allocation33_spill] sm:$0xff] %v4542_v27  ;;  %2181 = vmatprep.subr.mxu0 %v4513_v1  ;;  %5130 = vst [vmem:[#allocation38_spill] sm:$0xff] %v4549_v28  ;;  %v4554_v35 = vld [vmem:[%s4716_s3 + $0x10] sm:$0xff] }
 0x50a   :  { %2252 = vmatprep.subr.mxu1 %v4518_v38  ;;  %5131 = vst [vmem:[#allocation39_spill] sm:$0xff] %v4554_v35  ;;  %2182 = vmatpush1.msra.mxu0 %v4525_v56  ;;  %v128_v38 = vpop.permute.xlu1 %127 }
 0x50b   :  { %2253 = vmatpush1.msra.mxu1 %v4530_v43  ;;  %2183 = vmatprep.subr.mxu0 %v4537_v37  ;;  %v181_v1 = vmul.f32 %v5095_v48, %v128_v38  ;;  %v182_v26 = vmul.f32 %v5096_v53, %v128_v38  ;;  %v183_v56 = vmul.f32 %v5097_v40, %v128_v38 }
 0x50c   :  { %2254 = vmatprep.subr.mxu1 %v4542_v27  ;;  %2184 = vmatpush1.msra.mxu0 %v4549_v28  ;;  %v184_v43 = vmul.f32 %v3402_v0, %v128_v38 }
 0x50d   :  { %2255 = vmatpush1.msra.mxu1 %v4554_v35  ;;  %2422 = vmatprep.subr.mxu0 %v4181_v31  ;;  %v235_v37 = vadd.f32 %v5060_v33, %v181_v1  ;;  %v236_v27 = vadd.f32 %v5098_v39, %v182_v26  ;;  %v237_v28 = vadd.f32 %v5099_v42, %v183_v56 }
 0x50e   :  { %2493 = vmatprep.subr.mxu1 %v4186_v47  ;;  %v238_v35 = vadd.f32 %v3413_v50, %v184_v43 }
 0x50f   :  { %v364_v31 = vcombine.low %v235_v37, %v236_v27 }
 0x510   :  { %v365_v24 = vcombine.low %v237_v28, %v238_v35 }
 0x511   :  { %v372_v53 = vrot.slane %v364_v31, %v3173_v54 }
 0x512   :  { %v379_v40 = vrot.slane %v365_v24, %v3173_v54 }
 0x514   :  { %v380_v39 = vcombine.low %v372_v53, %v379_v40 }
 0x5ac   :  { %v1950_v47 = vpop.f32.mrf.mxu0  ;;  %v2021_v23 = vpop.f32.mrf.mxu1 }
 0x5ae   :  { %v1952_v22 = vpop.f32.mrf.mxu0  ;;  %v2023_v48 = vpop.f32.mrf.mxu1 }
 0x5af   :  { %v2030_v21 = vcombine.low %v1950_v47, %v1952_v22  ;;  %v2031_v38 = vcombine.low %v2021_v23, %v2023_v48 }
 0x5b1   :  { %v2038_v1 = vrot.slane %v2030_v21, %v3173_v54  ;;  %v2045_v26 = vrot.slane %v2031_v38, %v3173_v54 }
 0x5b3   :  { %v2046_v56 = vcombine.low %v2038_v1, %v2045_v26 }
 0x5b5   :  { %v2048_v42 = vadd.f32 %v2046_v56, %v380_v39  ;;  %v5160_v56 = vld [vmem:[#allocation25_spill] sm:$0xff] }
 0x5b7   :  { %2809 = vtanh.f32 %v2048_v42 }
 0x5c4   :  { %v2810_v37 = vpop.eup %2809 }
 0x5c5   :  { %v2058_v27 = vrot.slane %v2810_v37, %v3173_v54  ;;  %v2051_v28 = vcombine.high %v2810_v37, %v2810_v37  ;;  %v5161_v37 = vld [vmem:[#allocation33_spill] sm:$0xff] }
 0x5c7   :  { %v2066_v35 = vcombine.high %v2058_v27, %v2058_v27  ;;  %v2072_v22 = vmul.f32 %v2058_v27, %v3430_v51  ;;  %v2065_v43 = vrot.slane %v2051_v28, %v3173_v54  ;;  %v5162_v27 = vld [vmem:[#allocation38_spill] sm:$0xff]  ;;  %v5163_v28 = vmov 0.0  }
 0x5c9   :  { %v2073_v24 = vmul.f32 %v2066_v35, %v3435_v45  ;;  %v2074_v48 = vmul.f32 %v2065_v43, %v3438_v46  ;;  %v2076_v53 = vadd.f32 %v2072_v22, %v4987_v29  ;;  %v2067_v31 = vcombine.high %v2065_v43, %v2065_v43  ;;  %v5164_v35 = vld [vmem:[#allocation39_spill] sm:$0xff]  ;;  %v133_v22 = vpop.permute.xlu0 %132  ;;  %v5165_v43 = vld [vmem:[#allocation40_spill] sm:$0xff] }
 0x5cb   :  { %v2077_v21 = vadd.f32 %v2073_v24, %v3442_v55  ;;  %v2078_v40 = vadd.f32 %v2074_v48, %v3446_v41  ;;  %v2075_v47 = vmul.f32 %v2067_v31, %v3456_v44  ;;  %v185_v24 = vmul.f32 %v5165_v43, %v133_v22  ;;  %v5166_v48 = vld [vmem:[#allocation41_spill] sm:$0xff]  ;;  %v5168_v31 = vld [vmem:[#allocation44_spill] sm:$0xff] }
 0x5cd   :  { %v2080_v39 = vmul.f32 %v2077_v21, %v4164_v25  ;;  %v2081_v42 = vmul.f32 %v2078_v40, %v2076_v53  ;;  %v2079_v38 = vadd.f32 %v2075_v47, %v3459_v52  ;;  %v186_v21 = vmul.f32 %v5166_v48, %v133_v22  ;;  %v5167_v53 = vld [vmem:[#allocation42_spill] sm:$0xff] }
 0x5ce   :  { %v187_v40 = vmul.f32 %v5167_v53, %v133_v22 }
 0x5cf   :  { %v4585_v23 = vadd.f32 %v2081_v42, %v2080_v39  ;;  %v188_v39 = vmul.f32 %v3402_v0, %v133_v22  ;;  %v239_v42 = vadd.f32 %v5060_v33, %v185_v24  ;;  %v240_v47 = vadd.f32 %v5168_v31, %v186_v21 }
 0x5d1   :  { %2811 = vtanh.f32 %v4585_v23 }
 0x5de   :  { %v2812_v1 = vpop.eup %2811 }
 0x5df   :  { %v2084_v26 = vmul.f32 %v2812_v1, %v2079_v38  ;;  %v5169_v38 = vld [vmem:[#allocation45_spill] sm:$0xff] }
 0x5e0   :  { %v241_v1 = vadd.f32 %v5169_v38, %v187_v40 }
 0x5e1   :  { %2086 = vst [vmem:[#allocation3 + $0xa] sm:$0x3] %v2084_v26  ;;  %2218 = vmatmul.mubr.f32.vlgmr.msra.gmra.mxu0 %v2084_v26  ;;  %2289 = vmatmul.mubr.f32.vlgmr.msra.gmra.mxu1 %v2084_v26  ;;  %v242_v26 = vadd.f32 %v3413_v50, %v188_v39 }
 0x5e2   :  { %2423 = vmatpush1.msra.mxu0 %v4193_v32  ;;  %2494 = vmatpush1.msra.mxu1 %v4198_v49 }
 0x5e3   :  { %2424 = vmatprep.subr.mxu0 %v4205_v2  ;;  %2495 = vmatprep.subr.mxu1 %v4210_v36  ;;  %v5132_v2 = vld [vmem:[#allocation9_spill] sm:$0xff]  ;;  %v5133_v36 = vld [vmem:[#allocation10_spill] sm:$0xff] }
 0x5e4   :  { %2425 = vmatpush1.msra.mxu0 %v4217_v57  ;;  %2496 = vmatpush1.msra.mxu1 %v4222_v34  ;;  %v5134_v57 = vld [vmem:[#allocation43_spill] sm:$0xff] }
 0x5e5   :  { %2426 = vmatprep.subr.mxu0 %v4229_v62  ;;  %2497 = vmatprep.subr.mxu1 %v4234_v58  ;;  %v5135_v34 = vld [vmem:[#allocation11_spill] sm:$0xff]  ;;  %v5136_v62 = vld [vmem:[#allocation12_spill] sm:$0xff]  ;;  %v5137_v58 = vld [vmem:[#allocation13_spill] sm:$0xff] }
 0x5e6   :  { %2427 = vmatpush1.msra.mxu0 %v4241_v63  ;;  %2498 = vmatpush1.msra.mxu1 %v4246_v59  ;;  %v5138_v63 = vld [vmem:[#allocation14_spill] sm:$0xff]  ;;  %v5139_v59 = vld [vmem:[#allocation15_spill] sm:$0xff] }
 0x5e7   :  { %2428 = vmatprep.subr.mxu0 %v4253_v30  ;;  %2499 = vmatprep.subr.mxu1 %v4258_v60  ;;  %v5140_v30 = vld [vmem:[#allocation16_spill] sm:$0xff]  ;;  %v5141_v60 = vld [vmem:[#allocation17_spill] sm:$0xff] }
 0x5e8   :  { %v2630_v25 = vld [vmem:[#allocation3 + $0xa] sm:$0x3]  ;;  %2429 = vmatpush1.msra.mxu0 %v4265_v3  ;;  %2500 = vmatpush1.msra.mxu1 %v4270_v4  ;;  %v5142_v3 = vld [vmem:[#allocation18_spill] sm:$0xff] }
 0x5e9   :  { %v2645_v32 = vmul.f32 %v4174_v61, %v2630_v25  ;;  %2430 = vmatprep.subr.mxu0 %v4277_v5  ;;  %2501 = vmatprep.subr.mxu1 %v4282_v6  ;;  %v5143_v4 = vld [vmem:[#allocation19_spill] sm:$0xff]  ;;  %v5144_v5 = vld [vmem:[#allocation20_spill] sm:$0xff]  ;;  %v5145_v6 = vld [vmem:[#allocation21_spill] sm:$0xff]  ;;  %v381_v25 = vcombine.low %v239_v42, %v240_v47 }
 0x5ea   :  { %2431 = vmatpush1.msra.mxu0 %v4289_v7  ;;  %2502 = vmatpush1.msra.mxu1 %v4294_v8  ;;  %v5146_v7 = vld [vmem:[#allocation22_spill] sm:$0xff]  ;;  %v5147_v8 = vld [vmem:[#allocation23_spill] sm:$0xff] }
 0x5eb   :  { %v2664_v49 = vsel %vm2648_vm0, %v2645_v32, 0.0  ;;  %2432 = vmatprep.subr.mxu0 %v4301_v9  ;;  %2503 = vmatprep.subr.mxu1 %v4306_v10  ;;  %v5148_v9 = vld [vmem:[#allocation24_spill] sm:$0xff]  ;;  %v5149_v10 = vld [vmem:[#allocation27_spill] sm:$0xff]  ;;  %v382_v32 = vcombine.low %v241_v1, %v242_v26 }
 0x5ec   :  { %2665 = vadd.xlane.f32.xlu0 %v2664_v49  ;;  %2433 = vmatpush1.msra.mxu0 %v4313_v11  ;;  %v5150_v11 = vld [vmem:[#allocation28_spill] sm:$0xff] }
 0x5ed   :  { %2504 = vmatpush1.msra.mxu1 %v4318_v12  ;;  %2434 = vmatprep.subr.mxu0 %v4323_v13  ;;  %v5151_v12 = vld [vmem:[#allocation29_spill] sm:$0xff]  ;;  %v5152_v13 = vld [vmem:[#allocation30_spill] sm:$0xff] }
 0x5ee   :  { %2505 = vmatprep.subr.mxu1 %v4330_v14  ;;  %2435 = vmatpush1.msra.mxu0 %v4335_v15  ;;  %v5153_v14 = vld [vmem:[#allocation31_spill] sm:$0xff]  ;;  %v5154_v15 = vld [vmem:[#allocation32_spill] sm:$0xff] }
 0x5ef   :  { %2506 = vmatpush1.msra.mxu1 %v4340_v16  ;;  %2436 = vmatprep.subr.mxu0 %v4347_v17  ;;  %v5155_v16 = vld [vmem:[#allocation34_spill] sm:$0xff]  ;;  %v5156_v17 = vld [vmem:[#allocation35_spill] sm:$0xff] }
 0x5f0   :  { %2507 = vmatprep.subr.mxu1 %v4352_v18  ;;  %2437 = vmatpush1.msra.mxu0 %v4357_v19  ;;  %v5157_v18 = vld [vmem:[#allocation36_spill] sm:$0xff]  ;;  %v5158_v19 = vld [vmem:[#allocation37_spill] sm:$0xff] }
 0x5f1   :  { %2508 = vmatpush1.msra.mxu1 %v4364_v20  ;;  %2438 = vmatprep.subr.mxu0 %v5132_v2  ;;  %v5159_v20 = vld [vmem:[#allocation26_spill] sm:$0xff] }
 0x5f2   :  { %2509 = vmatprep.subr.mxu1 %v5133_v36  ;;  %2439 = vmatpush1.msra.mxu0 %v5134_v57 }
 0x5f3   :  { %2510 = vmatpush1.msra.mxu1 %v5135_v34  ;;  %2440 = vmatprep.subr.mxu0 %v5136_v62  ;;  %v389_v62 = vrot.slane %v381_v25, %v3173_v54 }
 0x5f4   :  { %2511 = vmatprep.subr.mxu1 %v5137_v58  ;;  %2441 = vmatpush1.msra.mxu0 %v5138_v63  ;;  %v396_v58 = vrot.slane %v382_v32, %v3173_v54 }
 0x5f5   :  { %2512 = vmatpush1.msra.mxu1 %v5139_v59  ;;  %2442 = vmatprep.subr.mxu0 %v5140_v30 }
 0x5f6   :  { %2513 = vmatprep.subr.mxu1 %v5141_v60  ;;  %2443 = vmatpush1.msra.mxu0 %v5142_v3  ;;  %v397_v60 = vcombine.low %v389_v62, %v396_v58 }
 0x5f7   :  { %2514 = vmatpush1.msra.mxu1 %v5143_v4  ;;  %2444 = vmatprep.subr.mxu0 %v5144_v5 }
 0x5f8   :  { %2515 = vmatprep.subr.mxu1 %v5145_v6  ;;  %2445 = vmatpush1.msra.mxu0 %v5146_v7 }
 0x5f9   :  { %2516 = vmatpush1.msra.mxu1 %v5147_v8  ;;  %2446 = vmatprep.subr.mxu0 %v5148_v9 }
 0x5fa   :  { %2517 = vmatprep.subr.mxu1 %v5149_v10  ;;  %2447 = vmatpush1.msra.mxu0 %v5150_v11 }
 0x5fb   :  { %2518 = vmatpush1.msra.mxu1 %v5151_v12  ;;  %2448 = vmatprep.subr.mxu0 %v5152_v13 }
 0x5fc   :  { %2519 = vmatprep.subr.mxu1 %v5153_v14  ;;  %2449 = vmatpush1.msra.mxu0 %v5154_v15 }
 0x5fd   :  { %2520 = vmatpush1.msra.mxu1 %v5155_v16  ;;  %2450 = vmatprep.subr.mxu0 %v5156_v17 }
 0x5fe   :  { %2521 = vmatprep.subr.mxu1 %v5157_v18  ;;  %2451 = vmatpush1.msra.mxu0 %v5158_v19 }
 0x5ff   :  { %2522 = vmatpush1.msra.mxu1 %v5159_v20  ;;  %2452 = vmatprep.subr.mxu0 %v5160_v56 }
 0x600   :  { %2523 = vmatprep.subr.mxu1 %v5161_v37  ;;  %2453 = vmatpush1.msra.mxu0 %v5162_v27 }
 0x601   :  { %2486 = vmatprep.mubr.f32.mxu0 %v5163_v28  ;;  %2524 = vmatpush1.msra.mxu1 %v5164_v35 }
 0x602   :  { %2557 = vmatprep.mubr.f32.mxu1 %v5163_v28 }
 0x6a1   :  { %v2219_v49 = vpop.f32.mrf.mxu0  ;;  %v2290_v2 = vpop.f32.mrf.mxu1 }
 0x6a3   :  { %v2221_v36 = vpop.f32.mrf.mxu0  ;;  %v2292_v57 = vpop.f32.mrf.mxu1 }
 0x6a4   :  { %v2299_v34 = vcombine.low %v2219_v49, %v2221_v36  ;;  %v2300_v63 = vcombine.low %v2290_v2, %v2292_v57 }
 0x6a6   :  { %v2307_v59 = vrot.slane %v2299_v34, %v3173_v54  ;;  %v2314_v30 = vrot.slane %v2300_v63, %v3173_v54 }
 0x6a8   :  { %v2315_v3 = vcombine.low %v2307_v59, %v2314_v30 }
 0x6aa   :  { %v2317_v4 = vadd.f32 %v2315_v3, %v397_v60 }
 0x6ac   :  { %2813 = vtanh.f32 %v2317_v4 }
 0x6b9   :  { %v2814_v5 = vpop.eup %2813 }
 0x6ba   :  { %v2327_v6 = vrot.slane %v2814_v5, %v3173_v54  ;;  %v2320_v7 = vcombine.high %v2814_v5, %v2814_v5 }
 0x6bc   :  { %v2335_v8 = vcombine.high %v2327_v6, %v2327_v6  ;;  %v2341_v9 = vmul.f32 %v2327_v6, %v3430_v51  ;;  %v2334_v10 = vrot.slane %v2320_v7, %v3173_v54 }
 0x6be   :  { %v2342_v11 = vmul.f32 %v2335_v8, %v3435_v45  ;;  %v2343_v12 = vmul.f32 %v2334_v10, %v3438_v46  ;;  %v2345_v14 = vadd.f32 %v2341_v9, %v4987_v29  ;;  %v2336_v19 = vcombine.high %v2334_v10, %v2334_v10 }
 0x6c0   :  { %v2346_v13 = vadd.f32 %v2342_v11, %v3442_v55  ;;  %v2347_v15 = vadd.f32 %v2343_v12, %v3446_v41  ;;  %v2344_v20 = vmul.f32 %v2336_v19, %v3456_v44 }
 0x6c2   :  { %v2349_v16 = vmul.f32 %v2346_v13, %v4585_v23  ;;  %v2350_v17 = vmul.f32 %v2347_v15, %v2345_v14  ;;  %v2348_v56 = vadd.f32 %v2344_v20, %v3459_v52  ;;  %v138_v23 = vpop.permute.xlu1 %137  ;;  %v5170_v14 = vlaneseq }
 0x6c3   :  { %v189_v24 = vmul.f32 %v5165_v43, %v138_v23  ;;  %v190_v21 = vmul.f32 %v5166_v48, %v138_v23  ;;  %v191_v40 = vmul.f32 %v5167_v53, %v138_v23  ;;  %v192_v39 = vmul.f32 %v3402_v0, %v138_v23 }
 0x6c4   :  { %v2351_v18 = vadd.f32 %v2350_v17, %v2349_v16  ;;  %v2682_v15 = vand.u32 127, %v5170_v14 }
 0x6c5   :  { %v243_v42 = vadd.f32 %v5060_v33, %v189_v24  ;;  %v244_v47 = vadd.f32 %v5168_v31, %v190_v21  ;;  %v245_v1 = vadd.f32 %v5169_v38, %v191_v40  ;;  %v246_v26 = vadd.f32 %v3413_v50, %v192_v39 }
 0x6c6   :  { %2815 = vtanh.f32 %v2351_v18  ;;  %v2654_v16 = vpop.xlane.xlu1 %2653 }
 0x6c7   :  { %v398_v25 = vcombine.low %v243_v42, %v244_v47  ;;  %v399_v32 = vcombine.low %v245_v1, %v246_v26 }
 0x6c9   :  { %v406_v48 = vrot.slane %v398_v25, %v3173_v54  ;;  %v413_v53 = vrot.slane %v399_v32, %v3173_v54  ;;  %v2763_v25 = vstv %s4720_s7 }
 0x6cb   :  { %v414_v34 = vcombine.low %v406_v48, %v413_v53 }
 0x6d3   :  { %v2816_v37 = vpop.eup %2815 }
 0x6d4   :  { %v2353_v27 = vmul.f32 %v2816_v37, %v2348_v56 }
 0x6d6   :  { %2355 = vst [vmem:[#allocation3 + $0xc] sm:$0x3] %v2353_v27  ;;  %2487 = vmatmul.mubr.f32.vlgmr.msra.gmra.mxu0 %v2353_v27  ;;  %2558 = vmatmul.mubr.f32.vlgmr.msra.gmra.mxu1 %v2353_v27 }
 0x6dd   :  { %v2631_v28 = vld [vmem:[#allocation3 + $0xc] sm:$0x3] }
 0x6de   :  { %v2646_v35 = vmul.f32 %v4174_v61, %v2631_v28 }
 0x6e0   :  { %v2667_v22 = vsel %vm2648_vm0, %v2646_v35, 0.0 }
 0x6e1   :  { %2668 = vadd.xlane.f32.xlu1 %v2667_v22 }
 0x796   :  { %v2488_v49 = vpop.f32.mrf.mxu0  ;;  %v2559_v2 = vpop.f32.mrf.mxu1 }
 0x798   :  { %v2490_v36 = vpop.f32.mrf.mxu0  ;;  %v2561_v43 = vpop.f32.mrf.mxu1 }
 0x799   :  { %v2568_v57 = vcombine.low %v2488_v49, %v2490_v36  ;;  %v2569_v0 = vcombine.low %v2559_v2, %v2561_v43 }
 0x79b   :  { %v2576_v33 = vrot.slane %v2568_v57, %v3173_v54  ;;  %v2583_v31 = vrot.slane %v2569_v0, %v3173_v54 }
 0x79d   :  { %v2584_v38 = vcombine.low %v2576_v33, %v2583_v31 }
 0x79f   :  { %v2586_v62 = vadd.f32 %v2584_v38, %v414_v34 }
 0x7a1   :  { %2817 = vtanh.f32 %v2586_v62 }
 0x7ae   :  { %v2818_v50 = vpop.eup %2817 }
 0x7af   :  { %v2589_v58 = vcombine.high %v2818_v50, %v2818_v50  ;;  %v2596_v63 = vrot.slane %v2818_v50, %v3173_v54 }
 0x7b1   :  { %v2603_v59 = vrot.slane %v2589_v58, %v3173_v54  ;;  %v2604_v30 = vcombine.high %v2596_v63, %v2596_v63  ;;  %v2610_v60 = vmul.f32 %v2596_v63, %v3430_v51 }
 0x7b3   :  { %v2611_v3 = vmul.f32 %v2604_v30, %v3435_v45  ;;  %v2612_v4 = vmul.f32 %v2603_v59, %v3438_v46  ;;  %v2614_v5 = vadd.f32 %v2610_v60, %v4987_v29  ;;  %v2605_v11 = vcombine.high %v2603_v59, %v2603_v59 }
 0x7b5   :  { %v2615_v6 = vadd.f32 %v2611_v3, %v3442_v55  ;;  %v2616_v7 = vadd.f32 %v2612_v4, %v3446_v41  ;;  %v2613_v54 = vmul.f32 %v2605_v11, %v3456_v44  ;;  %v2651_v55 = vpop.xlane.xlu0 %2650  ;;  %v2663_v44 = vpop.xlane.xlu1 %2662 }
 0x7b7   :  { %v2618_v8 = vmul.f32 %v2615_v6, %v2351_v18  ;;  %v2619_v9 = vmul.f32 %v2616_v7, %v2614_v5  ;;  %v2617_v12 = vadd.f32 %v2613_v54, %v3459_v52  ;;  %v5171_v18 = vld [vmem:[#allocation8_spill] sm:$0xff] }
 0x7b8   :  { %v2685_v19 = vsub.s32 %v2682_v15, %v5171_v18 }
 0x7b9   :  { %v2620_v10 = vadd.f32 %v2619_v9, %v2618_v8  ;;  %v2657_v41 = vpop.xlane.xlu0 %2656 }
 0x7ba   :  { %v2690_v20 = vrot.slane %v2654_v16, %v2685_v19  ;;  %v2694_v52 = vrot.slane %v2657_v41, %v2685_v19  ;;  %v2686_v37 = vrot.slane %v2651_v55, %v2685_v19  ;;  %v2702_v28 = vrot.slane %v2663_v44, %v2685_v19 }
 0x7bb   :  { %2819 = vtanh.f32 %v2620_v10 }
 0x7bc   :  { %v2716_v35 = vsel %vm2715_vm1, %v2690_v20, %v2686_v37 }
 0x7bd   :  { %v2660_v17 = vpop.xlane.xlu0 %2659  ;;  %v2718_v23 = vsel %vm2717_vm2, %v2694_v52, %v2716_v35 }
 0x7be   :  { %v2698_v27 = vrot.slane %v2660_v17, %v2685_v19 }
 0x7c0   :  { %v2720_v21 = vsel %vm2719_vm3, %v2698_v27, %v2718_v23 }
 0x7c1   :  { %v2666_v56 = vpop.xlane.xlu0 %2665  ;;  %v2722_v40 = vsel %vm2721_vm4, %v2702_v28, %v2720_v21 }
 0x7c2   :  { %v2706_v22 = vrot.slane %v2666_v56, %v2685_v19 }
 0x7c4   :  { %v2724_v42 = vsel %vm2723_vm5, %v2706_v22, %v2722_v40 }
 0x7c8   :  { %v2820_v51 = vpop.eup %2819 }
 0x7c9   :  { %v2622_v13 = vmul.f32 %v2820_v51, %v2617_v12 }
 0x7cb   :  { %2624 = vst [vmem:[#allocation3 + $0xe] sm:$0x3] %v2622_v13 }
 0x7d2   :  { %v2632_v45 = vld [vmem:[#allocation3 + $0xe] sm:$0x3] }
 0x7d3   :  { %v2647_v46 = vmul.f32 %v4174_v61, %v2632_v45  ;;  %v2669_v61 = vpop.xlane.xlu1 %2668 }
 0x7d4   :  { %v2710_v24 = vrot.slane %v2669_v61, %v2685_v19 }
 0x7d5   :  { %v2670_v29 = vsel %vm2648_vm0, %v2647_v46, 0.0 }
 0x7d6   :  { %2671 = vadd.xlane.f32.xlu0 %v2670_v29  ;;  %v2726_v1 = vsel %vm2725_vm6, %v2710_v24, %v2724_v42 }
 0x85f   :  { %v2672_v39 = vpop.xlane.xlu0 %2671 }
 0x860   :  { %v2714_v47 = vrot.slane %v2672_v39, %v2685_v19 }
 0x862   :  { %v2728_v26 = vsel %vm2727_vm7, %v2714_v47, %v2726_v1 }
 0x863   :  { %2730 = vxpose.xlu1.b32.start.end [1/1] (short) (narrow) %v2728_v26, 8 }
 0x8df   :  { %v2746_v32 = vpop.trf.xlu1 }
 0x8e0   :  { %v2764_v49 = vadd.f32 %v2763_v25, %v2746_v32 }
 0x8e2   :  { %2766 = vst.msk [vmem:[#allocation5] sm:$0x3] %vm2765_vm8, %v2764_v49 }
 0x8e3   :  { %2833 = shalt.err (!%p2830_p4)
}
 0x8e4   :  { %2776 = dma.vmem_to_hbm [thread:$0]  %s2774_s0, 32, %s4721_s8, [#allocation6]  }
 0x8e5   :  { %2842 = dma.done.wait [#allocation6], 32  }
 0x8e6   :  { %2843 = vsyncadd [#allocation6], 4294967264 }
 0x8e7   :  { %2780 = vsyncpa [#allocation6], 1 }

</bundles_post_ra>
